<compile_context>
chip_gen: v5e
topology: v5e:2x2
jax: 0.10.0
libtpu: 0.0.40
codegen_flags: <defaults>
</compile_context>

<pallas_src>
import jax
import jax.numpy as jnp
from jax.experimental import pallas as pl
from jax.experimental.pallas import tpu as pltpu

EPS = 1e-5

# 3x3 taps, k = dy*3 + dx ; spatial offset = (dy-1, dx-1)
_TAPS = [(dy, dx) for dy in range(3) for dx in range(3)]


def _tap_ranges(off, size):
    """Dest range [d0,d1) and source range [s0,s1) along one axis, off in {-1,0,1}."""
    d0 = max(0, -off)
    d1 = size - max(0, off)
    return d0, d1, d0 + off, d1 + off


def _build_patches(src_load, patch_ref, H, W, C):
    """Fill patch_ref (H, W, 9*C) with im2col taps of a (H, W, C) image.

    `src_load(sr0, sr1, sc0, sc1)` returns the source window (already in the
    patch dtype).  Only the missing 1-pixel border strips are zeroed.
    """
    cdt = patch_ref.dtype
    for k, (dy, dx) in enumerate(_TAPS):
        oy, ox = dy - 1, dx - 1
        r0, r1, sr0, sr1 = _tap_ranges(oy, H)
        c0, c1, sc0, sc1 = _tap_ranges(ox, W)
        lo, hi = k * C, (k + 1) * C
        if r0 > 0:
            patch_ref[0:r0, :, lo:hi] = jnp.zeros((r0, W, C), cdt)
        if r1 < H:
            patch_ref[r1:H, :, lo:hi] = jnp.zeros((H - r1, W, C), cdt)
        if c0 > 0:
            patch_ref[:, 0:c0, lo:hi] = jnp.zeros((H, c0, C), cdt)
        if c1 < W:
            patch_ref[:, c1:W, lo:hi] = jnp.zeros((H, W - c1, C), cdt)
        patch_ref[r0:r1, c0:c1, lo:hi] = src_load(sr0, sr1, sc0, sc1)


# --------------------------- pass 1: conv1 + partial BN1 stats ---------------------------
def _conv1_kernel(x_ref, w_ref, y_ref, stats_ref, patch_ref):
    # x_ref: (1,H,W,Cin)  w_ref: (9*Cin,Cout)  y_ref: (1,H,W,Cout)  stats_ref: (1,2,Cout)
    _, H, W, Cin = x_ref.shape
    Cout = y_ref.shape[-1]
    cdt = patch_ref.dtype

    _build_patches(lambda sr0, sr1, sc0, sc1: x_ref[0, sr0:sr1, sc0:sc1, :].astype(cdt),
                   patch_ref, H, W, Cin)

    patches = patch_ref[...].reshape(H * W, 9 * Cin)
    acc = jnp.dot(patches, w_ref[...], preferred_element_type=jnp.float32)

    # raw conv1 output (conv bias dropped: cancelled by training-mode BN mean)
    y_ref[0] = acc.reshape(H, W, Cout)
    # per-tile partial statistics, reduced across the grid in the wrapper
    stats_ref[0, 0:1, :] = jnp.sum(acc, axis=0, keepdims=True)
    stats_ref[0, 1:2, :] = jnp.sum(acc * acc, axis=0, keepdims=True)


# ------------------ pass 2: fused BN1+ReLU, conv2, partial BN2 stats ------------------
def _conv2_kernel(y1_ref, scale1_ref, shift1_ref, w_ref, y2_ref, stats_ref, patch_ref):
    _, H, W, C = y1_ref.shape
    Cout = y2_ref.shape[-1]
    cdt = patch_ref.dtype
    scale1 = scale1_ref[...]          # (1,1,C)
    shift1 = shift1_ref[...]          # (1,1,C)

    def load_tap(sr0, sr1, sc0, sc1):
        h = y1_ref[0, sr0:sr1, sc0:sc1, :] * scale1 + shift1    # BN1 affine
        return jnp.maximum(h, 0.0).astype(cdt)                  # ReLU

    _build_patches(load_tap, patch_ref, H, W, C)

    patches = patch_ref[...].reshape(H * W, 9 * C)
    acc = jnp.dot(patches, w_ref[...], preferred_element_type=jnp.float32)

    y2_ref[0] = acc.reshape(H, W, Cout)
    stats_ref[0, 0:1, :] = jnp.sum(acc, axis=0, keepdims=True)
    stats_ref[0, 1:2, :] = jnp.sum(acc * acc, axis=0, keepdims=True)


# ----------------------- pass 3: BN2 + residual add + ReLU -----------------------
def _bn2_residual_kernel(y2_ref, x_ref, scale2_ref, shift2_ref, o_ref):
    out = y2_ref[0] * scale2_ref[...] + shift2_ref[...] + x_ref[0].astype(jnp.float32)
    o_ref[0] = jnp.maximum(out, 0.0).astype(o_ref.dtype)


def _bn_affine(stats, gamma, beta, count):
    """Finalize global BN (training-mode, biased var) from per-tile (sum, sumsq)."""
    tot = jnp.sum(stats, axis=0)                       # (2, C)
    mean = tot[0] / count
    var = jnp.maximum(tot[1] / count - mean * mean, 0.0)
    scale = gamma * jax.lax.rsqrt(var + EPS)
    shift = beta - mean * scale
    C = scale.shape[0]
    return (scale.reshape(1, 1, C).astype(jnp.float32),
            shift.reshape(1, 1, C).astype(jnp.float32))


def residual_block(x_nchw, params, *, mxu_dtype=jnp.float32, vmem_limit_bytes=None):
    """ResidualBlock forward.  x_nchw: (N, C, H, W) f32 -> (N, C, H, W) f32."""
    w1, b1, g1, be1, w2, b2, g2, be2 = params
    del b1, b2  # cancelled exactly by training-mode BatchNorm mean subtraction

    x = jnp.transpose(x_nchw, (0, 2, 3, 1)).astype(jnp.float32)   # NCHW -> NHWC
    N, H, W, Cin = x.shape
    Cout = w1.shape[-1]
    assert Cin == Cout, "downsample=None path requires in_channels == out_channels"

    # (3,3,Ci,Co) -> (9*Ci, Co), tap-major / channel-minor (matches patch layout)
    w1f = w1.reshape(9 * Cin, Cout).astype(mxu_dtype)
    w2f = w2.reshape(9 * Cout, Cout).astype(mxu_dtype)

    cparams = pltpu.CompilerParams(dimension_semantics=("parallel",),
                                   vmem_limit_bytes=vmem_limit_bytes)
    count = N * H * W

    # NOTE: for very large H*W, additionally tile H in row chunks with a 1-row halo.
    # NOTE: for C < 128, packing (W, C) onto lanes would make output stores lane-dense.

    # ---------------- pass 1: conv1 ----------------
    y1, stats1 = pl.pallas_call(
        _conv1_kernel,
        grid=(N,),
        in_specs=[
            pl.BlockSpec((1, H, W, Cin), lambda i: (i, 0, 0, 0)),
            pl.BlockSpec((9 * Cin, Cout), lambda i: (0, 0)),
        ],
        out_specs=[
            pl.BlockSpec((1, H, W, Cout), lambda i: (i, 0, 0, 0)),
            pl.BlockSpec((1, 2, Cout), lambda i: (i, 0, 0)),
        ],
        out_shape=[
            jax.ShapeDtypeStruct((N, H, W, Cout), jnp.float32),
            jax.ShapeDtypeStruct((N, 2, Cout), jnp.float32),
        ],
        scratch_shapes=[pltpu.VMEM((H, W, 9 * Cin), mxu_dtype)],
        compiler_params=cparams,
    )(x, w1f)

    scale1, shift1 = _bn_affine(stats1, g1, be1, count)

    # ---------------- pass 2: BN1+ReLU fused into conv2 ----------------
    y2, stats2 = pl.pallas_call(
        _conv2_kernel,
        grid=(N,),
        in_specs=[
            pl.BlockSpec((1, H, W, Cout), lambda i: (i, 0, 0, 0)),
            pl.BlockSpec((1, 1, Cout), lambda i: (0, 0, 0)),
            pl.BlockSpec((1, 1, Cout), lambda i: (0, 0, 0)),
            pl.BlockSpec((9 * Cout, Cout), lambda i: (0, 0)),
        ],
        out_specs=[
            pl.BlockSpec((1, H, W, Cout), lambda i: (i, 0, 0, 0)),
            pl.BlockSpec((1, 2, Cout), lambda i: (i, 0, 0)),
        ],
        out_shape=[
            jax.ShapeDtypeStruct((N, H, W, Cout), jnp.float32),
            jax.ShapeDtypeStruct((N, 2, Cout), jnp.float32),
        ],
        scratch_shapes=[pltpu.VMEM((H, W, 9 * Cout), mxu_dtype)],
        compiler_params=cparams,
    )(y1, scale1, shift1, w2f)

    scale2, shift2 = _bn_affine(stats2, g2, be2, count)

    # ---------------- pass 3: BN2 + residual + ReLU ----------------
    out = pl.pallas_call(
        _bn2_residual_kernel,
        grid=(N,),
        in_specs=[
            pl.BlockSpec((1, H, W, Cout), lambda i: (i, 0, 0, 0)),
            pl.BlockSpec((1, H, W, Cin), lambda i: (i, 0, 0, 0)),
            pl.BlockSpec((1, 1, Cout), lambda i: (0, 0, 0)),
            pl.BlockSpec((1, 1, Cout), lambda i: (0, 0, 0)),
        ],
        out_specs=pl.BlockSpec((1, H, W, Cout), lambda i: (i, 0, 0, 0)),
        out_shape=jax.ShapeDtypeStruct((N, H, W, Cout), jnp.float32),
        compiler_params=cparams,
    )(y2, x, scale2, shift2)

    return jnp.transpose(out, (0, 3, 1, 2))                      # NHWC -> NCHW


# --------------------------- pure-JAX reference (spec) ---------------------------
def reference(x_nchw, params):
    w1, b1, g1, be1, w2, b2, g2, be2 = params
    x = jnp.transpose(x_nchw, (0, 2, 3, 1)).astype(jnp.float32)

    def conv(h, w, b):
        y = jax.lax.conv_general_dilated(
            h, w, window_strides=(1, 1), padding=[(1, 1), (1, 1)],
            dimension_numbers=('NHWC', 'HWIO', 'NHWC'))
        return y + b

    def bn(h, g, be):
        m = jnp.mean(h, axis=(0, 1, 2))
        v = jnp.mean((h - m) ** 2, axis=(0, 1, 2))
        return (h - m) * jax.lax.rsqrt(v + EPS) * g + be

    out = jnp.maximum(bn(conv(x, w1, b1), g1, be1), 0.0)
    out = bn(conv(out, w2, b2), g2, be2)
    out = jnp.maximum(out + x, 0.0)
    return jnp.transpose(out, (0, 3, 1, 2))


def init_params(key, cin, cout):
    k = jax.random.split(key, 8)
    w1 = jax.random.normal(k[0], (3, 3, cin, cout), jnp.float32) * 0.1   # HWIO
    b1 = jax.random.normal(k[1], (cout,), jnp.float32) * 0.1
    g1 = 1.0 + 0.1 * jax.random.normal(k[2], (cout,), jnp.float32)
    be1 = 0.1 * jax.random.normal(k[3], (cout,), jnp.float32)
    w2 = jax.random.normal(k[4], (3, 3, cout, cout), jnp.float32) * 0.1
    b2 = jax.random.normal(k[5], (cout,), jnp.float32) * 0.1
    g2 = 1.0 + 0.1 * jax.random.normal(k[6], (cout,), jnp.float32)
    be2 = 0.1 * jax.random.normal(k[7], (cout,), jnp.float32)
    return (w1, b1, g1, be1, w2, b2, g2, be2)


if __name__ == "__main__":
    key = jax.random.PRNGKey(0)
    kx, kp = jax.random.split(key)

    N, C, H, W = 2, 4, 16, 16                      # in_channels == out_channels == 4
    x = jax.random.normal(kx, (N, C, H, W), jnp.float32)
    params = init_params(kp, C, C)

    out = jax.block_until_ready(residual_block(x, params))
    ref = jax.block_until_ready(reference(x, params))

    assert out.shape == (N, C, H, W)
    assert jnp.max(jnp.abs(out - ref)) < 1e-4, "mismatch vs. pure-JAX reference"
    print("KERNEL_OK")
</pallas_src>

<mosaic_0001>
module attributes {stable_mosaic.version = 11 : i64} {
  func.func @_conv1_kernel(%arg0: i32, %arg1: memref<1x16x16x4xf32, #tpu.memory_space<vmem>>, %arg2: memref<36x4xf32, #tpu.memory_space<vmem>>, %arg3: memref<1x16x16x4xf32, #tpu.memory_space<vmem>>, %arg4: memref<1x2x4xf32, #tpu.memory_space<vmem>>, %arg5: memref<16x16x36xf32, #tpu.memory_space<vmem>>) attributes {dimension_semantics = [#tpu.dimension_semantics<parallel>], iteration_bounds = array<i64: 2>, scalar_prefetch = 0 : i64, scratch_operands = 1 : i64, tpu.core_type = #tpu.core_type<tc>, window_params = [{transform_indices = @transform_0, window_bounds = array<i64: 1, 16, 16, 4>}, {pipeline_mode = #tpu.pipeline_mode<synchronous>, transform_indices = @transform_1, window_bounds = array<i64: 36, 4>}, {transform_indices = @transform_2, window_bounds = array<i64: 1, 16, 16, 4>}, {transform_indices = @transform_3, window_bounds = array<i64: 1, 2, 4>}]} {
    %cst = arith.constant 0.000000e+00 : f32
    %0 = vector.broadcast %cst : f32 to vector<1x16x4xf32>
    %c0 = arith.constant 0 : index
    %c0_0 = arith.constant 0 : index
    %c0_1 = arith.constant 0 : index
    %1 = vector.load %arg5[%c0, %c0_0, %c0_1] : memref<16x16x36xf32, #tpu.memory_space<vmem>>, vector<1x16x4xf32>
    tpu.vector_store %arg5[%c0, %c0_0, %c0_1], %0 {strides = array<i32>} : memref<16x16x36xf32, #tpu.memory_space<vmem>>, vector<1x16x4xf32>,
    %cst_2 = arith.constant 0.000000e+00 : f32
    %2 = vector.broadcast %cst_2 : f32 to vector<16x1x4xf32>
    %c0_3 = arith.constant 0 : index
    %c0_4 = arith.constant 0 : index
    %c0_5 = arith.constant 0 : index
    %3 = vector.load %arg5[%c0_3, %c0_4, %c0_5] : memref<16x16x36xf32, #tpu.memory_space<vmem>>, vector<16x1x4xf32>
    tpu.vector_store %arg5[%c0_3, %c0_4, %c0_5], %2 {strides = array<i32>} : memref<16x16x36xf32, #tpu.memory_space<vmem>>, vector<16x1x4xf32>,
    %c0_6 = arith.constant 0 : index
    %c0_7 = arith.constant 0 : index
    %c0_8 = arith.constant 0 : index
    %c0_9 = arith.constant 0 : index
    %4 = vector.load %arg1[%c0_6, %c0_7, %c0_8, %c0_9] : memref<1x16x16x4xf32, #tpu.memory_space<vmem>>, vector<1x15x15x4xf32>
    %5 = vector.shape_cast %4 : vector<1x15x15x4xf32> to vector<15x15x4xf32>
    %c1 = arith.constant 1 : index
    %c1_10 = arith.constant 1 : index
    %c0_11 = arith.constant 0 : index
    %6 = vector.load %arg5[%c1, %c1_10, %c0_11] : memref<16x16x36xf32, #tpu.memory_space<vmem>>, vector<15x15x4xf32>
    tpu.vector_store %arg5[%c1, %c1_10, %c0_11], %5 {strides = array<i32>} : memref<16x16x36xf32, #tpu.memory_space<vmem>>, vector<15x15x4xf32>,
    %cst_12 = arith.constant 0.000000e+00 : f32
    %7 = vector.broadcast %cst_12 : f32 to vector<1x16x4xf32>
    %c0_13 = arith.constant 0 : index
    %c0_14 = arith.constant 0 : index
    %c4 = arith.constant 4 : index
    %8 = vector.load %arg5[%c0_13, %c0_14, %c4] : memref<16x16x36xf32, #tpu.memory_space<vmem>>, vector<1x16x4xf32>
    tpu.vector_store %arg5[%c0_13, %c0_14, %c4], %7 {strides = array<i32>} : memref<16x16x36xf32, #tpu.memory_space<vmem>>, vector<1x16x4xf32>,
    %c0_15 = arith.constant 0 : index
    %c0_16 = arith.constant 0 : index
    %c0_17 = arith.constant 0 : index
    %c0_18 = arith.constant 0 : index
    %9 = vector.load %arg1[%c0_15, %c0_16, %c0_17, %c0_18] : memref<1x16x16x4xf32, #tpu.memory_space<vmem>>, vector<1x15x16x4xf32>
    %10 = vector.shape_cast %9 : vector<1x15x16x4xf32> to vector<15x16x4xf32>
    %c1_19 = arith.constant 1 : index
    %c0_20 = arith.constant 0 : index
    %c4_21 = arith.constant 4 : index
    %11 = vector.load %arg5[%c1_19, %c0_20, %c4_21] : memref<16x16x36xf32, #tpu.memory_space<vmem>>, vector<15x16x4xf32>
    tpu.vector_store %arg5[%c1_19, %c0_20, %c4_21], %10 {strides = array<i32>} : memref<16x16x36xf32, #tpu.memory_space<vmem>>, vector<15x16x4xf32>,
    %cst_22 = arith.constant 0.000000e+00 : f32
    %12 = vector.broadcast %cst_22 : f32 to vector<1x16x4xf32>
    %c0_23 = arith.constant 0 : index
    %c0_24 = arith.constant 0 : index
    %c8 = arith.constant 8 : index
    %13 = vector.load %arg5[%c0_23, %c0_24, %c8] : memref<16x16x36xf32, #tpu.memory_space<vmem>>, vector<1x16x4xf32>
    tpu.vector_store %arg5[%c0_23, %c0_24, %c8], %12 {strides = array<i32>} : memref<16x16x36xf32, #tpu.memory_space<vmem>>, vector<1x16x4xf32>,
    %cst_25 = arith.constant 0.000000e+00 : f32
    %14 = vector.broadcast %cst_25 : f32 to vector<16x1x4xf32>
    %c0_26 = arith.constant 0 : index
    %c15 = arith.constant 15 : index
    %c8_27 = arith.constant 8 : index
    %15 = vector.load %arg5[%c0_26, %c15, %c8_27] : memref<16x16x36xf32, #tpu.memory_space<vmem>>, vector<16x1x4xf32>
    tpu.vector_store %arg5[%c0_26, %c15, %c8_27], %14 {strides = array<i32>} : memref<16x16x36xf32, #tpu.memory_space<vmem>>, vector<16x1x4xf32>,
    %c0_28 = arith.constant 0 : index
    %c0_29 = arith.constant 0 : index
    %c1_30 = arith.constant 1 : index
    %c0_31 = arith.constant 0 : index
    %16 = vector.load %arg1[%c0_28, %c0_29, %c1_30, %c0_31] : memref<1x16x16x4xf32, #tpu.memory_space<vmem>>, vector<1x15x15x4xf32>
    %17 = vector.shape_cast %16 : vector<1x15x15x4xf32> to vector<15x15x4xf32>
    %c1_32 = arith.constant 1 : index
    %c0_33 = arith.constant 0 : index
    %c8_34 = arith.constant 8 : index
    %18 = vector.load %arg5[%c1_32, %c0_33, %c8_34] : memref<16x16x36xf32, #tpu.memory_space<vmem>>, vector<15x15x4xf32>
    tpu.vector_store %arg5[%c1_32, %c0_33, %c8_34], %17 {strides = array<i32>} : memref<16x16x36xf32, #tpu.memory_space<vmem>>, vector<15x15x4xf32>,
    %cst_35 = arith.constant 0.000000e+00 : f32
    %19 = vector.broadcast %cst_35 : f32 to vector<16x1x4xf32>
    %c0_36 = arith.constant 0 : index
    %c0_37 = arith.constant 0 : index
    %c12 = arith.constant 12 : index
    %20 = vector.load %arg5[%c0_36, %c0_37, %c12] : memref<16x16x36xf32, #tpu.memory_space<vmem>>, vector<16x1x4xf32>
    tpu.vector_store %arg5[%c0_36, %c0_37, %c12], %19 {strides = array<i32>} : memref<16x16x36xf32, #tpu.memory_space<vmem>>, vector<16x1x4xf32>,
    %c0_38 = arith.constant 0 : index
    %c0_39 = arith.constant 0 : index
    %c0_40 = arith.constant 0 : index
    %c0_41 = arith.constant 0 : index
    %21 = vector.load %arg1[%c0_38, %c0_39, %c0_40, %c0_41] : memref<1x16x16x4xf32, #tpu.memory_space<vmem>>, vector<1x16x15x4xf32>
    %22 = vector.shape_cast %21 : vector<1x16x15x4xf32> to vector<16x15x4xf32>
    %c0_42 = arith.constant 0 : index
    %c1_43 = arith.constant 1 : index
    %c12_44 = arith.constant 12 : index
    %23 = vector.load %arg5[%c0_42, %c1_43, %c12_44] : memref<16x16x36xf32, #tpu.memory_space<vmem>>, vector<16x15x4xf32>
    tpu.vector_store %arg5[%c0_42, %c1_43, %c12_44], %22 {strides = array<i32>} : memref<16x16x36xf32, #tpu.memory_space<vmem>>, vector<16x15x4xf32>,
    %c0_45 = arith.constant 0 : index
    %c0_46 = arith.constant 0 : index
    %c0_47 = arith.constant 0 : index
    %c0_48 = arith.constant 0 : index
    %24 = vector.load %arg1[%c0_45, %c0_46, %c0_47, %c0_48] : memref<1x16x16x4xf32, #tpu.memory_space<vmem>>, vector<1x16x16x4xf32>
    %25 = vector.shape_cast %24 : vector<1x16x16x4xf32> to vector<16x16x4xf32>
    %c0_49 = arith.constant 0 : index
    %c0_50 = arith.constant 0 : index
    %c16 = arith.constant 16 : index
    %26 = vector.load %arg5[%c0_49, %c0_50, %c16] : memref<16x16x36xf32, #tpu.memory_space<vmem>>, vector<16x16x4xf32>
    tpu.vector_store %arg5[%c0_49, %c0_50, %c16], %25 {strides = array<i32>} : memref<16x16x36xf32, #tpu.memory_space<vmem>>, vector<16x16x4xf32>,
    %cst_51 = arith.constant 0.000000e+00 : f32
    %27 = vector.broadcast %cst_51 : f32 to vector<16x1x4xf32>
    %c0_52 = arith.constant 0 : index
    %c15_53 = arith.constant 15 : index
    %c20 = arith.constant 20 : index
    %28 = vector.load %arg5[%c0_52, %c15_53, %c20] : memref<16x16x36xf32, #tpu.memory_space<vmem>>, vector<16x1x4xf32>
    tpu.vector_store %arg5[%c0_52, %c15_53, %c20], %27 {strides = array<i32>} : memref<16x16x36xf32, #tpu.memory_space<vmem>>, vector<16x1x4xf32>,
    %c0_54 = arith.constant 0 : index
    %c0_55 = arith.constant 0 : index
    %c1_56 = arith.constant 1 : index
    %c0_57 = arith.constant 0 : index
    %29 = vector.load %arg1[%c0_54, %c0_55, %c1_56, %c0_57] : memref<1x16x16x4xf32, #tpu.memory_space<vmem>>, vector<1x16x15x4xf32>
    %30 = vector.shape_cast %29 : vector<1x16x15x4xf32> to vector<16x15x4xf32>
    %c0_58 = arith.constant 0 : index
    %c0_59 = arith.constant 0 : index
    %c20_60 = arith.constant 20 : index
    %31 = vector.load %arg5[%c0_58, %c0_59, %c20_60] : memref<16x16x36xf32, #tpu.memory_space<vmem>>, vector<16x15x4xf32>
    tpu.vector_store %arg5[%c0_58, %c0_59, %c20_60], %30 {strides = array<i32>} : memref<16x16x36xf32, #tpu.memory_space<vmem>>, vector<16x15x4xf32>,
    %cst_61 = arith.constant 0.000000e+00 : f32
    %32 = vector.broadcast %cst_61 : f32 to vector<1x16x4xf32>
    %c15_62 = arith.constant 15 : index
    %c0_63 = arith.constant 0 : index
    %c24 = arith.constant 24 : index
    %33 = vector.load %arg5[%c15_62, %c0_63, %c24] : memref<16x16x36xf32, #tpu.memory_space<vmem>>, vector<1x16x4xf32>
    tpu.vector_store %arg5[%c15_62, %c0_63, %c24], %32 {strides = array<i32>} : memref<16x16x36xf32, #tpu.memory_space<vmem>>, vector<1x16x4xf32>,
    %cst_64 = arith.constant 0.000000e+00 : f32
    %34 = vector.broadcast %cst_64 : f32 to vector<16x1x4xf32>
    %c0_65 = arith.constant 0 : index
    %c0_66 = arith.constant 0 : index
    %c24_67 = arith.constant 24 : index
    %35 = vector.load %arg5[%c0_65, %c0_66, %c24_67] : memref<16x16x36xf32, #tpu.memory_space<vmem>>, vector<16x1x4xf32>
    tpu.vector_store %arg5[%c0_65, %c0_66, %c24_67], %34 {strides = array<i32>} : memref<16x16x36xf32, #tpu.memory_space<vmem>>, vector<16x1x4xf32>,
    %c0_68 = arith.constant 0 : index
    %c1_69 = arith.constant 1 : index
    %c0_70 = arith.constant 0 : index
    %c0_71 = arith.constant 0 : index
    %36 = vector.load %arg1[%c0_68, %c1_69, %c0_70, %c0_71] : memref<1x16x16x4xf32, #tpu.memory_space<vmem>>, vector<1x15x15x4xf32>
    %37 = vector.shape_cast %36 : vector<1x15x15x4xf32> to vector<15x15x4xf32>
    %c0_72 = arith.constant 0 : index
    %c1_73 = arith.constant 1 : index
    %c24_74 = arith.constant 24 : index
    %38 = vector.load %arg5[%c0_72, %c1_73, %c24_74] : memref<16x16x36xf32, #tpu.memory_space<vmem>>, vector<15x15x4xf32>
    tpu.vector_store %arg5[%c0_72, %c1_73, %c24_74], %37 {strides = array<i32>} : memref<16x16x36xf32, #tpu.memory_space<vmem>>, vector<15x15x4xf32>,
    %cst_75 = arith.constant 0.000000e+00 : f32
    %39 = vector.broadcast %cst_75 : f32 to vector<1x16x4xf32>
    %c15_76 = arith.constant 15 : index
    %c0_77 = arith.constant 0 : index
    %c28 = arith.constant 28 : index
    %40 = vector.load %arg5[%c15_76, %c0_77, %c28] : memref<16x16x36xf32, #tpu.memory_space<vmem>>, vector<1x16x4xf32>
    tpu.vector_store %arg5[%c15_76, %c0_77, %c28], %39 {strides = array<i32>} : memref<16x16x36xf32, #tpu.memory_space<vmem>>, vector<1x16x4xf32>,
    %c0_78 = arith.constant 0 : index
    %c1_79 = arith.constant 1 : index
    %c0_80 = arith.constant 0 : index
    %c0_81 = arith.constant 0 : index
    %41 = vector.load %arg1[%c0_78, %c1_79, %c0_80, %c0_81] : memref<1x16x16x4xf32, #tpu.memory_space<vmem>>, vector<1x15x16x4xf32>
    %42 = vector.shape_cast %41 : vector<1x15x16x4xf32> to vector<15x16x4xf32>
    %c0_82 = arith.constant 0 : index
    %c0_83 = arith.constant 0 : index
    %c28_84 = arith.constant 28 : index
    %43 = vector.load %arg5[%c0_82, %c0_83, %c28_84] : memref<16x16x36xf32, #tpu.memory_space<vmem>>, vector<15x16x4xf32>
    tpu.vector_store %arg5[%c0_82, %c0_83, %c28_84], %42 {strides = array<i32>} : memref<16x16x36xf32, #tpu.memory_space<vmem>>, vector<15x16x4xf32>,
    %cst_85 = arith.constant 0.000000e+00 : f32
    %44 = vector.broadcast %cst_85 : f32 to vector<1x16x4xf32>
    %c15_86 = arith.constant 15 : index
    %c0_87 = arith.constant 0 : index
    %c32 = arith.constant 32 : index
    %45 = vector.load %arg5[%c15_86, %c0_87, %c32] : memref<16x16x36xf32, #tpu.memory_space<vmem>>, vector<1x16x4xf32>
    tpu.vector_store %arg5[%c15_86, %c0_87, %c32], %44 {strides = array<i32>} : memref<16x16x36xf32, #tpu.memory_space<vmem>>, vector<1x16x4xf32>,
    %cst_88 = arith.constant 0.000000e+00 : f32
    %46 = vector.broadcast %cst_88 : f32 to vector<16x1x4xf32>
    %c0_89 = arith.constant 0 : index
    %c15_90 = arith.constant 15 : index
    %c32_91 = arith.constant 32 : index
    %47 = vector.load %arg5[%c0_89, %c15_90, %c32_91] : memref<16x16x36xf32, #tpu.memory_space<vmem>>, vector<16x1x4xf32>
    tpu.vector_store %arg5[%c0_89, %c15_90, %c32_91], %46 {strides = array<i32>} : memref<16x16x36xf32, #tpu.memory_space<vmem>>, vector<16x1x4xf32>,
    %c0_92 = arith.constant 0 : index
    %c1_93 = arith.constant 1 : index
    %c1_94 = arith.constant 1 : index
    %c0_95 = arith.constant 0 : index
    %48 = vector.load %arg1[%c0_92, %c1_93, %c1_94, %c0_95] : memref<1x16x16x4xf32, #tpu.memory_space<vmem>>, vector<1x15x15x4xf32>
    %49 = vector.shape_cast %48 : vector<1x15x15x4xf32> to vector<15x15x4xf32>
    %c0_96 = arith.constant 0 : index
    %c0_97 = arith.constant 0 : index
    %c32_98 = arith.constant 32 : index
    %50 = vector.load %arg5[%c0_96, %c0_97, %c32_98] : memref<16x16x36xf32, #tpu.memory_space<vmem>>, vector<15x15x4xf32>
    tpu.vector_store %arg5[%c0_96, %c0_97, %c32_98], %49 {strides = array<i32>} : memref<16x16x36xf32, #tpu.memory_space<vmem>>, vector<15x15x4xf32>,
    %c0_99 = arith.constant 0 : index
    %c0_100 = arith.constant 0 : index
    %c0_101 = arith.constant 0 : index
    %51 = vector.load %arg5[%c0_99, %c0_100, %c0_101] : memref<16x16x36xf32, #tpu.memory_space<vmem>>, vector<16x16x36xf32>
    %52 = vector.shape_cast %51 : vector<16x16x36xf32> to vector<256x36xf32>
    %c0_102 = arith.constant 0 : index
    %c0_103 = arith.constant 0 : index
    %53 = vector.load %arg2[%c0_102, %c0_103] : memref<36x4xf32, #tpu.memory_space<vmem>>, vector<36x4xf32>
    %cst_104 = arith.constant dense<0.000000e+00> : vector<256x4xf32>
    %54 = tpu.matmul %52, %53, %cst_104 {dimension_numbers = #tpu.dot_dimension_numbers<[1], [0], [0], [1], [0, 0, 1, 1], [], []>} : vector<256x36xf32>, vector<36x4xf32>, vector<256x4xf32> -> vector<256x4xf32>
    %55 = vector.shape_cast %54 : vector<256x4xf32> to vector<16x16x4xf32>
    %c0_105 = arith.constant 0 : index
    %c0_106 = arith.constant 0 : index
    %c0_107 = arith.constant 0 : index
    %c0_108 = arith.constant 0 : index
    %56 = vector.load %arg3[%c0_105, %c0_106, %c0_107, %c0_108] : memref<1x16x16x4xf32, #tpu.memory_space<vmem>>, vector<1x16x16x4xf32>
    %57 = vector.shape_cast %56 : vector<1x16x16x4xf32> to vector<16x16x4xf32>
    %58 = vector.shape_cast %55 : vector<16x16x4xf32> to vector<1x16x16x4xf32>
    tpu.vector_store %arg3[%c0_105, %c0_106, %c0_107, %c0_108], %58 {strides = array<i32>} : memref<1x16x16x4xf32, #tpu.memory_space<vmem>>, vector<1x16x16x4xf32>,
    %cst_109 = arith.constant dense<0.000000e+00> : vector<4xf32>
    %59 = vector.multi_reduction <add>, %54, %cst_109 [0] : vector<256x4xf32> to vector<4xf32>
    %60 = vector.shape_cast %59 : vector<4xf32> to vector<1x4xf32>
    %c0_110 = arith.constant 0 : index
    %c0_111 = arith.constant 0 : index
    %c0_112 = arith.constant 0 : index
    %61 = vector.load %arg4[%c0_110, %c0_111, %c0_112] : memref<1x2x4xf32, #tpu.memory_space<vmem>>, vector<1x1x4xf32>
    %62 = vector.shape_cast %61 : vector<1x1x4xf32> to vector<1x4xf32>
    %63 = vector.shape_cast %60 : vector<1x4xf32> to vector<1x1x4xf32>
    tpu.vector_store %arg4[%c0_110, %c0_111, %c0_112], %63 {strides = array<i32>} : memref<1x2x4xf32, #tpu.memory_space<vmem>>, vector<1x1x4xf32>,
    %64 = arith.mulf %54, %54 : vector<256x4xf32>
    %cst_113 = arith.constant dense<0.000000e+00> : vector<4xf32>
    %65 = vector.multi_reduction <add>, %64, %cst_113 [0] : vector<256x4xf32> to vector<4xf32>
    %66 = vector.shape_cast %65 : vector<4xf32> to vector<1x4xf32>
    %c0_114 = arith.constant 0 : index
    %c1_115 = arith.constant 1 : index
    %c0_116 = arith.constant 0 : index
    %67 = vector.load %arg4[%c0_114, %c1_115, %c0_116] : memref<1x2x4xf32, #tpu.memory_space<vmem>>, vector<1x1x4xf32>
    %68 = vector.shape_cast %67 : vector<1x1x4xf32> to vector<1x4xf32>
    %69 = vector.shape_cast %66 : vector<1x4xf32> to vector<1x1x4xf32>
    tpu.vector_store %arg4[%c0_114, %c1_115, %c0_116], %69 {strides = array<i32>} : memref<1x2x4xf32, #tpu.memory_space<vmem>>, vector<1x1x4xf32>,
    return
  }
  func.func @transform_0(%arg0: i32) -> (i32, i32, i32, i32) {
    %c0_i32 = arith.constant 0 : i32
    %c0_i32_0 = arith.constant 0 : i32
    %c0_i32_1 = arith.constant 0 : i32
    %c0_i32_2 = arith.constant 0 : i32
    return %arg0, %c0_i32, %c0_i32_0, %c0_i32_1 : i32, i32, i32, i32
  }
  func.func @transform_1(%arg0: i32) -> (i32, i32) {
    %c0_i32 = arith.constant 0 : i32
    %c0_i32_0 = arith.constant 0 : i32
    %c0_i32_1 = arith.constant 0 : i32
    return %c0_i32, %c0_i32_0 : i32, i32
  }
  func.func @transform_2(%arg0: i32) -> (i32, i32, i32, i32) {
    %c0_i32 = arith.constant 0 : i32
    %c0_i32_0 = arith.constant 0 : i32
    %c0_i32_1 = arith.constant 0 : i32
    %c0_i32_2 = arith.constant 0 : i32
    return %arg0, %c0_i32, %c0_i32_0, %c0_i32_1 : i32, i32, i32, i32
  }
  func.func @transform_3(%arg0: i32) -> (i32, i32, i32) {
    %c0_i32 = arith.constant 0 : i32
    %c0_i32_0 = arith.constant 0 : i32
    %c0_i32_1 = arith.constant 0 : i32
    return %arg0, %c0_i32, %c0_i32_0 : i32, i32, i32
  }
}

</mosaic_0001>

<bundles_post_ra>
// kernel: tpu_custom_call.1
= control target key start
LH: loop header
LB: loop body
LE: loop exit
PB: predicated region body
PF: predicated region fallthrough
CT: control target
= control target key end

     0   :  { %9 = vsyncpa [#allocation4], 0  ;;  %s4181_s0 = inlined_call_operand.vmem [shape: f32[2,16,16,4], index: 0, kind: input, shape index: {}]   ;;  %s4182_s1 = inlined_call_operand.vmem [shape: f32[36,4], index: 1, kind: input, shape index: {}]   ;;  %s4183_s2 = inlined_call_operand.vmem [shape: f32[2,16,16,4], index: 2, kind: output, shape index: {0}]   ;;  %s4184_s3 = inlined_call_operand.hbm [shape: f32[2,2,4], index: 3, kind: output, shape index: {1}]  }
   0x1   :  { %11 = vsyncpa [#allocation4 + $0x1], 0  ;;  %s2707_s12 = smov 0   ;;  %s2709_s13 = smov 0  }
   0x2   :  { %s2711_s14 = smov 0   ;;  %s2713_s15 = smov 0  }
   0x3 LB: > { %s2728_s16 = sadd.s32 4294967295, %s2676_s15   ;;  %s2413_s17 = sadd.s32 4294967294, %s2676_s15   ;;  %s2676_s15 = sphi %s2713_s15, %s4190_s15   ;;  %s2672_s14 = sphi %s2711_s14, %s4189_s14   ;;  %s2668_s13 = sphi %s2709_s13, %s4188_s13   ;;  %s2664_s12 = sphi %s2707_s12, %s4187_s12  }
   0x4   : > { %s2732_s18 = sadd.s32 1, %s2676_s15   ;;  %s97_s19 = sadd.s32 1, %s2672_s14 }
   0x5   : > { %s94_s20 = ssub.s32 %s2676_s15, %s2732_s18  ;;  %p107_p0 = scmp.ne.s32.totalorder %s2672_s14, %s2668_s13 }
   0x6   : > { %p95_p1 = scmp.eq.s32.totalorder %s94_s20, 0  ;;  %p108_p2 = scmp.eq.s32.totalorder %s2728_s16, 1 }
   0x7   : > { %p113_p3 = scmp.ne.s32.totalorder %s2668_s13, %s2664_s12  ;;  %p114_p4 = scmp.eq.s32.totalorder %s2413_s17, 1 }
   0x8   : > { %s2743_s21 = scalar_select %p95_p1, %s2672_s14, %s97_s19  }
   0x9   : > { %p2745_p5 = por %p108_p2, %p107_p0  ;;  %p2749_p6 = por %p114_p4, %p113_p3 }
   0xa   : > { %p2416_p7 = scmp.ge.s32.totalorder %s2676_s15, 1  ;;  %p143_p8 = scmp.lt.s32.totalorder %s2676_s15, 3 }
   0xc   : > { %p144_p9 = pnand %p2416_p7, %p143_p8 }
   0xd   : > { %p172_p10 = scmp.lt.s32.totalorder (!%p144_p9), %s2728_s16, 1  ;;  %s2678_s29 = smov (!%p144_p9), 4  }
   0xe   : > { %147 = sbr.rel (%p144_p9) target bundleno = 964 (0x3c4), region = 28  ;;  %s2680_s30 = smov (!%p144_p9), 8  }
   0xf   : > { %s2681_s4 = smov (!%p144_p9), 12   ;;  %s2682_s5 = smov (!%p144_p9), 16  }
  0x10   : > { %s2683_s6 = smov (!%p144_p9), 20   ;;  %s2684_s7 = smov (!%p144_p9), 28  }
  0x11   : > { %s2685_s8 = smov (!%p144_p9), 24   ;;  %s2686_s9 = smov (!%p144_p9), 32  }
  0x13   : > { %s2757_s24 = scalar_select %p172_p10, %s2728_s16, 1  ;;  %vm185_vm0 = vcmask 24576   ;;  %vm182_vm1 = vcmask 31744   ;;  %v2679_v27 = vmov 0.0   ;;  %vm264_vm2 = vcmask 64544  }
  0x14   : > { %189 = vst.msk [vmem:[#allocation2 + $0x30] sm:$0x1] %vm185_vm0, %v2679_v27  ;;  %vm234_vm3 = vcmask 30720   ;;  %vm450_vm4 = vcmask 90176   ;;  %vm447_vm5 = vcmask 97344   ;;  %vm648_vm6 = vcmask 122976  }
  0x15   : > { %s2549_s25 = sshll.u32 %s2757_s24, 8  ;;  %183 = vst.msk [vmem:[#allocation2] sm:$0xff] %vm182_vm1, %v2679_v27  ;;  %vm618_vm7 = vcmask 96320   ;;  %vm825_vm8 = vcmask 130144   ;;  %vm827_vm9 = vcmask 129120   ;;  %vm1019_vm10 = vcmask 162944  }
  0x16   : > { %s2765_s28 = scalar_lea.vmem %s4181_s0, %s2549_s25  ;;  %184 = vst.msk [vmem:[#allocation2 + $0x8] sm:$0xff] %vm182_vm1, %v2679_v27  ;;  %vm1052_vm11 = vcmask 188576   ;;  %vm1231_vm12 = vcmask 194720   ;;  %vm1229_vm13 = vcmask 195744   ;;  %vm1267_vm14 = vcmask 221376   ;;  %s3848_s10 = scalar_lea.vmem %s4183_s2, %s2549_s25 }
  0x17   : > { %v2768_v0 = vld [vmem:[%s2765_s28 + $0x10] sm:$0xff]  ;;  %v2771_v1 = vld [vmem:[%s2765_s28] sm:$0xff]  ;;  %v2783_v3 = vld [vmem:[%s2765_s28 + $0x18] sm:$0xff]  ;;  %187 = vst.msk [vmem:[#allocation2 + $0x10] sm:$0x1] %vm185_vm0, %v2679_v27  ;;  %vm1984_vm15 = vcmask 1043456  }
  0x18   : > { %331 = vrot.lane.b32.xlu1 %v2768_v0, %s2678_s29  ;;  %327 = vrot.lane.b32.xlu0 %v2771_v1, %s2678_s29  ;;  %v2778_v2 = vld [vmem:[%s2765_s28 + $0x20] sm:$0xff]  ;;  %v2786_v4 = vld [vmem:[%s2765_s28 + $0x8] sm:$0xff]  ;;  %188 = vst.msk [vmem:[#allocation2 + $0x20] sm:$0x1] %vm185_vm0, %v2679_v27  ;;  %s169_s24 = sand.u32 1, %s2668_s13  }
  0x19   : > { %335 = vrot.lane.b32.xlu2 %v2778_v2, %s2678_s29  ;;  %v2789_v5 = vld [vmem:[%s2765_s28 + $0x28] sm:$0xff]  ;;  %v2798_v6 = vld [vmem:[%s2765_s28 + $0x38] sm:$0xff]  ;;  %v2801_v7 = vld [vmem:[%s2765_s28 + $0x30] sm:$0xff]  ;;  %238 = vst.msk [vmem:[#allocation2 + $0x31] sm:$0xff] %vm182_vm1, %v2778_v2  ;;  %s2417_s25 = sshll.u32 %s169_s24, 1 }
  0x1a   : > { %v2804_v8 = vld [vmem:[%s2765_s28 + $0x40] sm:$0xff]  ;;  %v2813_v9 = vld [vmem:[%s2765_s28 + $0x50] sm:$0xff]  ;;  %v2816_v10 = vld [vmem:[%s2765_s28 + $0x48] sm:$0xff]  ;;  %190 = vst.msk [vmem:[#allocation2 + $0x40] sm:$0x1] %vm185_vm0, %v2679_v27  ;;  %s171_s11 = scalar_lea.vmem [#allocation3], %s2417_s25 }
  0x1b   : > { %v2819_v11 = vld [vmem:[%s2765_s28 + $0x58] sm:$0xff]  ;;  %v2828_v12 = vld [vmem:[%s2765_s28 + $0x68] sm:$0xff]  ;;  %v2831_v13 = vld [vmem:[%s2765_s28 + $0x60] sm:$0xff]  ;;  %191 = vst.msk [vmem:[#allocation2 + $0x50] sm:$0x1] %vm185_vm0, %v2679_v27  ;;  %s2326_s17 = sshll.u32 %s171_s11, 4  ;;  %s2327_s17 = int_to_ptr.vmem [resolvable:$true] %s2326_s17 }
  0x1c   : > { %v2834_v14 = vld [vmem:[%s2765_s28 + $0x70] sm:$0xff]  ;;  %v2843_v15 = vld [vmem:[%s2765_s28 + $0x80] sm:$0xff]  ;;  %v2846_v16 = vld [vmem:[%s2765_s28 + $0x78] sm:$0xff]  ;;  %192 = vst.msk [vmem:[#allocation2 + $0x60] sm:$0x1] %vm185_vm0, %v2679_v27 }
  0x1d   : > { %v2849_v17 = vld [vmem:[%s2765_s28 + $0x88] sm:$0xff]  ;;  %v2858_v18 = vld [vmem:[%s2765_s28 + $0x98] sm:$0xff]  ;;  %v2861_v19 = vld [vmem:[%s2765_s28 + $0x90] sm:$0xff]  ;;  %193 = vst.msk [vmem:[#allocation2 + $0x70] sm:$0x1] %vm185_vm0, %v2679_v27 }
  0x1e   : > { %v2864_v20 = vld [vmem:[%s2765_s28 + $0xa0] sm:$0xff]  ;;  %v2873_v21 = vld [vmem:[%s2765_s28 + $0xb0] sm:$0xff]  ;;  %v2876_v22 = vld [vmem:[%s2765_s28 + $0xa8] sm:$0xff]  ;;  %194 = vst.msk [vmem:[#allocation2 + $0x80] sm:$0x1] %vm185_vm0, %v2679_v27 }
  0x1f   : > { %v2879_v23 = vld [vmem:[%s2765_s28 + $0xb8] sm:$0xff]  ;;  %v2888_v24 = vld [vmem:[%s2765_s28 + $0xc8] sm:$0xff]  ;;  %v2891_v25 = vld [vmem:[%s2765_s28 + $0xc0] sm:$0xff]  ;;  %195 = vst.msk [vmem:[#allocation2 + $0x90] sm:$0x1] %vm185_vm0, %v2679_v27 }
  0x20   : > { %333 = vrot.lane.b32.xlu1 %v2783_v3, %s2678_s29  ;;  %329 = vrot.lane.b32.xlu0 %v2786_v4, %s2678_s29  ;;  %v2894_v26 = vld [vmem:[%s2765_s28 + $0xd0] sm:$0xff]  ;;  %v2911_v28 = vld [vmem:[%s2765_s28 + $0xe0] sm:$0xff]  ;;  %196 = vst.msk [vmem:[#allocation2 + $0xa0] sm:$0x1] %vm185_vm0, %v2679_v27 }
  0x21   : > { %337 = vrot.lane.b32.xlu2 %v2789_v5, %s2678_s29  ;;  %v2914_v29 = vld [vmem:[%s2765_s28 + $0xd8] sm:$0xff]  ;;  %v2919_v30 = vld [vmem:[%s2765_s28 + $0xe8] sm:$0xff]  ;;  %197 = vst.msk [vmem:[#allocation2 + $0xb0] sm:$0x1] %vm185_vm0, %v2679_v27 }
  0x22   : > { %v468_v31 = vld [vmem:[%s2765_s28 + $0x9] sm:$0x7f]  ;;  %v2943_v32 = vld [vmem:[%s2765_s28 + $0x1] sm:$0xff]  ;;  %v2948_v33 = vld [vmem:[%s2765_s28 + $0x11] sm:$0xff]  ;;  %198 = vst.msk [vmem:[#allocation2 + $0xc0] sm:$0x1] %vm185_vm0, %v2679_v27 }
  0x23   : > { %199 = vst.msk [vmem:[#allocation2 + $0xd0] sm:$0x1] %vm185_vm0, %v2679_v27  ;;  %v207_v34 = vld [vmem:[%s2765_s28 + $0x28] sm:$0x7f]  ;;  %v470_v36 = vld [vmem:[%s2765_s28 + $0x19] sm:$0x7f] }
  0x24   : > { %200 = vst.msk [vmem:[#allocation2 + $0xe0] sm:$0x1] %vm185_vm0, %v2679_v27  ;;  %v2971_v35 = vld [vmem:[%s2765_s28 + $0x21] sm:$0xff]  ;;  %v472_v37 = vld [vmem:[%s2765_s28 + $0x29] sm:$0x7f]  ;;  %v2996_v42 = vld [vmem:[%s2765_s28 + $0x31] sm:$0xff] }
  0x25   : > { %201 = vst.msk [vmem:[#allocation2 + $0xf0] sm:$0x1] %vm185_vm0, %v2679_v27  ;;  %v205_v38 = vld [vmem:[%s2765_s28 + $0x18] sm:$0x7f]  ;;  %v203_v39 = vld [vmem:[%s2765_s28 + $0x8] sm:$0x7f] }
  0x26   : > { %186 = vst.msk [vmem:[#allocation2] sm:$0x1] %vm185_vm0, %v2679_v27  ;;  %v474_v41 = vld [vmem:[%s2765_s28 + $0x39] sm:$0x7f]  ;;  %v3000_v43 = vld [vmem:[%s2765_s28 + $0x41] sm:$0xff]  ;;  %v3021_v47 = vld [vmem:[%s2765_s28 + $0x51] sm:$0xff] }
  0x27   : > { %266 = vst.msk [vmem:[#allocation2 + $0x8] sm:$0xff] %vm264_vm2, %v2679_v27  ;;  %v213_v44 = vld [vmem:[%s2765_s28 + $0x58] sm:$0x7f]  ;;  %v476_v48 = vld [vmem:[%s2765_s28 + $0x49] sm:$0x7f]  ;;  %v3047_v53 = vld [vmem:[%s2765_s28 + $0x61] sm:$0xff] }
  0x28   : > { %341 = vrot.lane.b32.xlu1 %v2798_v6, %s2678_s29  ;;  %339 = vrot.lane.b32.xlu0 %v2801_v7, %s2678_s29  ;;  %265 = vst.msk [vmem:[#allocation2] sm:$0xff] %vm264_vm2, %v2679_v27  ;;  %v209_v45 = vld [vmem:[%s2765_s28 + $0x38] sm:$0x7f]  ;;  %v211_v51 = vld [vmem:[%s2765_s28 + $0x48] sm:$0x7f] }
  0x29   : > { %343 = vrot.lane.b32.xlu2 %v2804_v8, %s2678_s29  ;;  %239 = vst.msk [vmem:[#allocation2 + $0x39] sm:$0x7f] %vm234_vm3, %v207_v34  ;;  %v478_v49 = vld [vmem:[%s2765_s28 + $0x59] sm:$0x7f]  ;;  %v480_v52 = vld [vmem:[%s2765_s28 + $0x69] sm:$0x7f] }
  0x2a   : > { %236 = vst.msk [vmem:[#allocation2 + $0x21] sm:$0xff] %vm182_vm1, %v2768_v0  ;;  %v219_v54 = vld [vmem:[%s2765_s28 + $0x88] sm:$0x7f]  ;;  %v3052_v55 = vld [vmem:[%s2765_s28 + $0x71] sm:$0xff]  ;;  %v482_v61 = vld [vmem:[%s2765_s28 + $0x79] sm:$0x7f] }
  0x2b   : > { %233 = vst.msk [vmem:[#allocation2 + $0x11] sm:$0xff] %vm182_vm1, %v2771_v1  ;;  %v215_v59 = vld [vmem:[%s2765_s28 + $0x68] sm:$0x7f] }
  0x2c   : > { %242 = vst.msk [vmem:[#allocation2 + $0x51] sm:$0xff] %vm182_vm1, %v2804_v8  ;;  %v3064_v60 = vld [vmem:[%s2765_s28 + $0x81] sm:$0xff]  ;;  %v484_v62 = vld [vmem:[%s2765_s28 + $0x89] sm:$0x7f] }
  0x2d   : > { %244 = vst.msk [vmem:[#allocation2 + $0x61] sm:$0xff] %vm182_vm1, %v2813_v9 }
  0x2e   : > { %237 = vst.msk [vmem:[#allocation2 + $0x29] sm:$0x7f] %vm234_vm3, %v205_v38  ;;  %v217_v38 = vld [vmem:[%s2765_s28 + $0x78] sm:$0x7f] }
  0x2f   : > { %235 = vst.msk [vmem:[#allocation2 + $0x19] sm:$0x7f] %vm234_vm3, %v203_v39  ;;  %v3088_v39 = vld [vmem:[%s2765_s28 + $0xa1] sm:$0xff] }
  0x30   : > { %347 = vrot.lane.b32.xlu1 %v2813_v9, %s2678_s29  ;;  %345 = vrot.lane.b32.xlu0 %v2816_v10, %s2678_s29  ;;  %240 = vst.msk [vmem:[#allocation2 + $0x41] sm:$0xff] %vm182_vm1, %v2801_v7 }
  0x31   : > { %349 = vrot.lane.b32.xlu2 %v2819_v11, %s2678_s29  ;;  %245 = vst.msk [vmem:[#allocation2 + $0x69] sm:$0x7f] %vm234_vm3, %v213_v44 }
  0x32   : > { %248 = vst.msk [vmem:[#allocation2 + $0x81] sm:$0xff] %vm182_vm1, %v2834_v14 }
  0x33   : > { %250 = vst.msk [vmem:[#allocation2 + $0x91] sm:$0xff] %vm182_vm1, %v2843_v15 }
  0x34   : > { %246 = vst.msk [vmem:[#allocation2 + $0x71] sm:$0xff] %vm182_vm1, %v2831_v13 }
  0x35   : > { %241 = vst.msk [vmem:[#allocation2 + $0x49] sm:$0x7f] %vm234_vm3, %v209_v45 }
  0x36   : > { %254 = vst.msk [vmem:[#allocation2 + $0xb1] sm:$0xff] %vm182_vm1, %v2864_v20 }
  0x37   : > { %256 = vst.msk [vmem:[#allocation2 + $0xc1] sm:$0xff] %vm182_vm1, %v2873_v21 }
  0x38   : > { %353 = vrot.lane.b32.xlu1 %v2828_v12, %s2678_s29  ;;  %351 = vrot.lane.b32.xlu0 %v2831_v13, %s2678_s29  ;;  %252 = vst.msk [vmem:[#allocation2 + $0xa1] sm:$0xff] %vm182_vm1, %v2861_v19 }
  0x39   : > { %355 = vrot.lane.b32.xlu2 %v2834_v14, %s2678_s29  ;;  %260 = vst.msk [vmem:[#allocation2 + $0xe1] sm:$0xff] %vm182_vm1, %v2894_v26 }
  0x3a   : > { %262 = vst.msk [vmem:[#allocation2 + $0xf1] sm:$0xff] %vm182_vm1, %v2911_v28 }
  0x3b   : > { %258 = vst.msk [vmem:[#allocation2 + $0xd1] sm:$0xff] %vm182_vm1, %v2891_v25 }
  0x3c   : > { %243 = vst.msk [vmem:[#allocation2 + $0x59] sm:$0x7f] %vm234_vm3, %v211_v51 }
  0x3d   : > { %251 = vst.msk [vmem:[#allocation2 + $0x99] sm:$0x7f] %vm234_vm3, %v219_v54 }
  0x3e   : > { %247 = vst.msk [vmem:[#allocation2 + $0x79] sm:$0x7f] %vm234_vm3, %v215_v59  ;;  %v231_v59 = vld [vmem:[%s2765_s28 + $0xe8] sm:$0x7f] }
  0x3f   : > { %249 = vst.msk [vmem:[#allocation2 + $0x89] sm:$0x7f] %vm234_vm3, %v217_v38  ;;  %v227_v38 = vld [vmem:[%s2765_s28 + $0xc8] sm:$0x7f] }
  0x40   : > { %359 = vrot.lane.b32.xlu1 %v2843_v15, %s2678_s29  ;;  %357 = vrot.lane.b32.xlu0 %v2846_v16, %s2678_s29  ;;  %263 = vst.msk [vmem:[#allocation2 + $0xf9] sm:$0x7f] %vm234_vm3, %v231_v59 }
  0x41   : > { %361 = vrot.lane.b32.xlu2 %v2849_v17, %s2678_s29  ;;  %259 = vst.msk [vmem:[#allocation2 + $0xd9] sm:$0x7f] %vm234_vm3, %v227_v38 }
  0x42   : > { %448 = vst.msk [vmem:[#allocation2] sm:$0xff] %vm447_vm5, %v2679_v27 }
  0x43   : > { %449 = vst.msk [vmem:[#allocation2 + $0x8] sm:$0xff] %vm447_vm5, %v2679_v27 }
  0x44   : > { %451 = vst.msk [vmem:[#allocation2 + $0xf] sm:$0x1] %vm450_vm4, %v2679_v27 }
  0x45   : > { %649 = vst.msk [vmem:[#allocation2] sm:$0x1] %vm648_vm6, %v2679_v27 }
  0x48   : > { %365 = vrot.lane.b32.xlu1 %v2858_v18, %s2678_s29  ;;  %363 = vrot.lane.b32.xlu0 %v2861_v19, %s2678_s29 }
  0x49   : > { %367 = vrot.lane.b32.xlu2 %v2864_v20, %s2678_s29 }
  0x50   : > { %371 = vrot.lane.b32.xlu1 %v2873_v21, %s2678_s29  ;;  %369 = vrot.lane.b32.xlu0 %v2876_v22, %s2678_s29 }
  0x51   : > { %373 = vrot.lane.b32.xlu2 %v2879_v23, %s2678_s29 }
  0x58   : > { %377 = vrot.lane.b32.xlu1 %v2888_v24, %s2678_s29  ;;  %375 = vrot.lane.b32.xlu0 %v2891_v25, %s2678_s29 }
  0x59   : > { %379 = vrot.lane.b32.xlu2 %v2894_v26, %s2678_s29 }
  0x60   : > { %383 = vrot.lane.b32.xlu1 %v2911_v28, %s2678_s29  ;;  %381 = vrot.lane.b32.xlu0 %v2914_v29, %s2678_s29 }
  0x61   : > { %385 = vrot.lane.b32.xlu2 %v2919_v30, %s2678_s29 }
  0x68   : > { %529 = vrot.lane.b32.xlu1 %v468_v31, %s2680_s30  ;;  %527 = vrot.lane.b32.xlu0 %v2943_v32, %s2680_s30 }
  0x69   : > { %531 = vrot.lane.b32.xlu2 %v2948_v33, %s2680_s30 }
  0x70   : > { %535 = vrot.lane.b32.xlu1 %v2971_v35, %s2680_s30  ;;  %533 = vrot.lane.b32.xlu0 %v470_v36, %s2680_s30  ;;  %v486_v36 = vld [vmem:[%s2765_s28 + $0x99] sm:$0x7f] }
  0x71   : > { %537 = vrot.lane.b32.xlu2 %v472_v37, %s2680_s30  ;;  %v3082_v37 = vld [vmem:[%s2765_s28 + $0x91] sm:$0xff] }
  0x73   : > { %v336_v40 = vpop.permute.xlu2 %335 }
  0x74   : > { %421 = vst.msk [vmem:[#allocation2 + $0x30] sm:$0xff] %vm264_vm2, %v336_v40  ;;  %v225_v40 = vld [vmem:[%s2765_s28 + $0xb8] sm:$0x7f] }
  0x75   : > { %257 = vst.msk [vmem:[#allocation2 + $0xc9] sm:$0x7f] %vm234_vm3, %v225_v40  ;;  %v496_v40 = vld [vmem:[%s2765_s28 + $0xe9] sm:$0x7f] }
  0x78   : > { %541 = vrot.lane.b32.xlu1 %v474_v41, %s2680_s30  ;;  %539 = vrot.lane.b32.xlu0 %v2996_v42, %s2680_s30 }
  0x79   : > { %543 = vrot.lane.b32.xlu2 %v3000_v43, %s2680_s30 }
  0x7b   : > { %v338_v46 = vpop.permute.xlu2 %337 }
  0x7c   : > { %422 = vst.msk [vmem:[#allocation2 + $0x38] sm:$0xff] %vm264_vm2, %v338_v46  ;;  %v3104_v46 = vld [vmem:[%s2765_s28 + $0xb1] sm:$0xff] }
  0x7d   : > { %454 = vst.msk [vmem:[#allocation2 + $0x3f] sm:$0x1] %vm450_vm4, %v2679_v27 }
  0x80   : > { %547 = vrot.lane.b32.xlu1 %v3021_v47, %s2680_s30  ;;  %545 = vrot.lane.b32.xlu0 %v476_v48, %s2680_s30  ;;  %v488_v48 = vld [vmem:[%s2765_s28 + $0xa9] sm:$0x7f] }
  0x81   : > { %549 = vrot.lane.b32.xlu2 %v478_v49, %s2680_s30  ;;  %v221_v49 = vld [vmem:[%s2765_s28 + $0x98] sm:$0x7f] }
  0x82   : > { %253 = vst.msk [vmem:[#allocation2 + $0xa9] sm:$0x7f] %vm234_vm3, %v221_v49  ;;  %v229_v49 = vld [vmem:[%s2765_s28 + $0xd8] sm:$0x7f] }
  0x83   : > { %v344_v50 = vpop.permute.xlu2 %343  ;;  %261 = vst.msk [vmem:[#allocation2 + $0xe9] sm:$0x7f] %vm234_vm3, %v229_v49 }
  0x84   : > { %425 = vst.msk [vmem:[#allocation2 + $0x50] sm:$0xff] %vm264_vm2, %v344_v50  ;;  %v490_v50 = vld [vmem:[%s2765_s28 + $0xb9] sm:$0x7f] }
  0x88   : > { %553 = vrot.lane.b32.xlu1 %v480_v52, %s2680_s30  ;;  %551 = vrot.lane.b32.xlu0 %v3047_v53, %s2680_s30 }
  0x89   : > { %555 = vrot.lane.b32.xlu2 %v3052_v55, %s2680_s30 }
  0x8a   : > { %v332_v56 = vpop.permute.xlu1 %331  ;;  %v328_v57 = vpop.permute.xlu0 %327 }
  0x8b   : > { %419 = vst.msk [vmem:[#allocation2 + $0x20] sm:$0xff] %vm264_vm2, %v332_v56  ;;  %v350_v58 = vpop.permute.xlu2 %349  ;;  %v492_v56 = vld [vmem:[%s2765_s28 + $0xc9] sm:$0x7f] }
  0x8c   : > { %417 = vst.msk [vmem:[#allocation2 + $0x10] sm:$0xff] %vm264_vm2, %v328_v57  ;;  %v223_v57 = vld [vmem:[%s2765_s28 + $0xa8] sm:$0x7f] }
  0x8d   : > { %428 = vst.msk [vmem:[#allocation2 + $0x68] sm:$0xff] %vm264_vm2, %v350_v58  ;;  %v491_v58 = vld [vmem:[%s2765_s28 + $0xc1] sm:$0xff] }
  0x8e   : > { %457 = vst.msk [vmem:[#allocation2 + $0x6f] sm:$0x1] %vm450_vm4, %v2679_v27 }
  0x8f   : > { %255 = vst.msk [vmem:[#allocation2 + $0xb9] sm:$0x7f] %vm234_vm3, %v223_v57  ;;  %vm1466_vm3 = vcmask 261344  }
  0x90   : > { %559 = vrot.lane.b32.xlu1 %v3064_v60, %s2680_s30  ;;  %557 = vrot.lane.b32.xlu0 %v482_v61, %s2680_s30  ;;  %v493_v61 = vld [vmem:[%s2765_s28 + $0xd1] sm:$0xff] }
  0x91   : > { %561 = vrot.lane.b32.xlu2 %v484_v62, %s2680_s30 }
  0x92   : > { %v334_v63 = vpop.permute.xlu1 %333  ;;  %v330_v31 = vpop.permute.xlu0 %329 }
  0x93   : > { %420 = vst.msk [vmem:[#allocation2 + $0x28] sm:$0xff] %vm264_vm2, %v334_v63  ;;  %v356_v34 = vpop.permute.xlu2 %355 }
  0x94   : > { %453 = vst.msk [vmem:[#allocation2 + $0x2f] sm:$0x1] %vm450_vm4, %v2679_v27 }
  0x95   : > { %418 = vst.msk [vmem:[#allocation2 + $0x18] sm:$0xff] %vm264_vm2, %v330_v31 }
  0x96   : > { %452 = vst.msk [vmem:[#allocation2 + $0x1f] sm:$0x1] %vm450_vm4, %v2679_v27 }
  0x97   : > { %431 = vst.msk [vmem:[#allocation2 + $0x80] sm:$0xff] %vm264_vm2, %v356_v34  ;;  %v495_v34 = vld [vmem:[%s2765_s28 + $0xe1] sm:$0xff] }
  0x98   : > { %565 = vrot.lane.b32.xlu1 %v486_v36, %s2680_s30  ;;  %563 = vrot.lane.b32.xlu0 %v3082_v37, %s2680_s30  ;;  %v494_v36 = vld [vmem:[%s2765_s28 + $0xd9] sm:$0x7f] }
  0x99   : > { %567 = vrot.lane.b32.xlu2 %v3088_v39, %s2680_s30 }
  0x9a   : > { %v342_v41 = vpop.permute.xlu1 %341  ;;  %v340_v44 = vpop.permute.xlu0 %339 }
  0x9b   : > { %424 = vst.msk [vmem:[#allocation2 + $0x48] sm:$0xff] %vm264_vm2, %v342_v41  ;;  %v362_v45 = vpop.permute.xlu2 %361 }
  0x9c   : > { %455 = vst.msk [vmem:[#allocation2 + $0x4f] sm:$0x1] %vm450_vm4, %v2679_v27 }
  0x9d   : > { %423 = vst.msk [vmem:[#allocation2 + $0x40] sm:$0xff] %vm264_vm2, %v340_v44 }
  0x9e   : > { %434 = vst.msk [vmem:[#allocation2 + $0x98] sm:$0xff] %vm264_vm2, %v362_v45 }
  0x9f   : > { %460 = vst.msk [vmem:[#allocation2 + $0x9f] sm:$0x1] %vm450_vm4, %v2679_v27 }
  0xa0   : > { %571 = vrot.lane.b32.xlu1 %v3104_v46, %s2680_s30  ;;  %569 = vrot.lane.b32.xlu0 %v488_v48, %s2680_s30  ;;  %v666_v48 = vld [vmem:[%s2765_s28 + $0x8] sm:$0x7f] }
  0xa1   : > { %573 = vrot.lane.b32.xlu2 %v490_v50, %s2680_s30 }
  0xa2   : > { %v348_v51 = vpop.permute.xlu1 %347  ;;  %v346_v52 = vpop.permute.xlu0 %345 }
  0xa3   : > { %427 = vst.msk [vmem:[#allocation2 + $0x60] sm:$0xff] %vm264_vm2, %v348_v51  ;;  %v368_v54 = vpop.permute.xlu2 %367 }
  0xa4   : > { %426 = vst.msk [vmem:[#allocation2 + $0x58] sm:$0xff] %vm264_vm2, %v346_v52 }
  0xa5   : > { %456 = vst.msk [vmem:[#allocation2 + $0x5f] sm:$0x1] %vm450_vm4, %v2679_v27 }
  0xa6   : > { %437 = vst.msk [vmem:[#allocation2 + $0xb0] sm:$0xff] %vm264_vm2, %v368_v54  ;;  %v668_v54 = vld [vmem:[%s2765_s28 + $0x18] sm:$0x7f] }
  0xa8   : > { %577 = vrot.lane.b32.xlu1 %v492_v56, %s2680_s30  ;;  %575 = vrot.lane.b32.xlu0 %v491_v58, %s2680_s30  ;;  %v670_v56 = vld [vmem:[%s2765_s28 + $0x28] sm:$0x7f] }
  0xa9   : > { %579 = vrot.lane.b32.xlu2 %v493_v61, %s2680_s30  ;;  %v672_v61 = vld [vmem:[%s2765_s28 + $0x38] sm:$0x7f] }
  0xaa   : > { %v354_v62 = vpop.permute.xlu1 %353  ;;  %v352_v63 = vpop.permute.xlu0 %351 }
  0xab   : > { %430 = vst.msk [vmem:[#allocation2 + $0x78] sm:$0xff] %vm264_vm2, %v354_v62  ;;  %v374_v31 = vpop.permute.xlu2 %373 }
  0xac   : > { %458 = vst.msk [vmem:[#allocation2 + $0x7f] sm:$0x1] %vm450_vm4, %v2679_v27 }
  0xad   : > { %429 = vst.msk [vmem:[#allocation2 + $0x70] sm:$0xff] %vm264_vm2, %v352_v63 }
  0xae   : > { %440 = vst.msk [vmem:[#allocation2 + $0xc8] sm:$0xff] %vm264_vm2, %v374_v31 }
  0xaf   : > { %463 = vst.msk [vmem:[#allocation2 + $0xcf] sm:$0x1] %vm450_vm4, %v2679_v27 }
  0xb0   : > { %583 = vrot.lane.b32.xlu1 %v495_v34, %s2680_s30  ;;  %581 = vrot.lane.b32.xlu0 %v494_v36, %s2680_s30  ;;  %v674_v34 = vld [vmem:[%s2765_s28 + $0x48] sm:$0x7f]  ;;  %v676_v36 = vld [vmem:[%s2765_s28 + $0x58] sm:$0x7f] }
  0xb1   : > { %585 = vrot.lane.b32.xlu2 %v496_v40, %s2680_s30  ;;  %s2634_s30 = scalar_lea.hbm %s4184_s3, 4 }
  0xb2   : > { %v360_v41 = vpop.permute.xlu1 %359  ;;  %v358_v44 = vpop.permute.xlu0 %357 }
  0xb3   : > { %433 = vst.msk [vmem:[#allocation2 + $0x90] sm:$0xff] %vm264_vm2, %v360_v41  ;;  %v380_v45 = vpop.permute.xlu2 %379 }
  0xb4   : > { %432 = vst.msk [vmem:[#allocation2 + $0x88] sm:$0xff] %vm264_vm2, %v358_v44  ;;  %v678_v44 = vld [vmem:[%s2765_s28 + $0x68] sm:$0x7f] }
  0xb5   : > { %459 = vst.msk [vmem:[#allocation2 + $0x8f] sm:$0x1] %vm450_vm4, %v2679_v27 }
  0xb6   : > { %443 = vst.msk [vmem:[#allocation2 + $0xe0] sm:$0xff] %vm264_vm2, %v380_v45 }
  0xb8   : > { %731 = vrot.lane.b32.xlu1 %v666_v48, %s2681_s4  ;;  %729 = vrot.lane.b32.xlu0 %v2771_v1, %s2681_s4 }
  0xb9   : > { %733 = vrot.lane.b32.xlu2 %v2768_v0, %s2681_s4 }
  0xba   : > { %v366_v50 = vpop.permute.xlu1 %365  ;;  %v364_v51 = vpop.permute.xlu0 %363 }
  0xbb   : > { %436 = vst.msk [vmem:[#allocation2 + $0xa8] sm:$0xff] %vm264_vm2, %v366_v50  ;;  %v386_v52 = vpop.permute.xlu2 %385  ;;  %v680_v50 = vld [vmem:[%s2765_s28 + $0x78] sm:$0x7f] }
  0xbc   : > { %461 = vst.msk [vmem:[#allocation2 + $0xaf] sm:$0x1] %vm450_vm4, %v2679_v27 }
  0xbd   : > { %435 = vst.msk [vmem:[#allocation2 + $0xa0] sm:$0xff] %vm264_vm2, %v364_v51  ;;  %v682_v51 = vld [vmem:[%s2765_s28 + $0x88] sm:$0x7f] }
  0xbe   : > { %446 = vst.msk [vmem:[#allocation2 + $0xf8] sm:$0xff] %vm264_vm2, %v386_v52 }
  0xbf   : > { %466 = vst.msk [vmem:[#allocation2 + $0xff] sm:$0x1] %vm450_vm4, %v2679_v27 }
  0xc0   : > { %737 = vrot.lane.b32.xlu1 %v2778_v2, %s2681_s4  ;;  %735 = vrot.lane.b32.xlu0 %v668_v54, %s2681_s4 }
  0xc1   : > { %739 = vrot.lane.b32.xlu2 %v670_v56, %s2681_s4 }
  0xc2   : > { %v372_v57 = vpop.permute.xlu1 %371  ;;  %v370_v58 = vpop.permute.xlu0 %369 }
  0xc3   : > { %439 = vst.msk [vmem:[#allocation2 + $0xc0] sm:$0xff] %vm264_vm2, %v372_v57  ;;  %v532_v59 = vpop.permute.xlu2 %531  ;;  %v684_v57 = vld [vmem:[%s2765_s28 + $0x98] sm:$0x7f] }
  0xc4   : > { %438 = vst.msk [vmem:[#allocation2 + $0xb8] sm:$0xff] %vm264_vm2, %v370_v58 }
  0xc5   : > { %462 = vst.msk [vmem:[#allocation2 + $0xbf] sm:$0x1] %vm450_vm4, %v2679_v27 }
  0xc6   : > { %620 = vst.msk [vmem:[#allocation2 + $0x20] sm:$0xff] %vm447_vm5, %v532_v59 }
  0xc7   : > { %651 = vst.msk [vmem:[#allocation2 + $0x20] sm:$0x1] %vm648_vm6, %v2679_v27 }
  0xc8   : > { %743 = vrot.lane.b32.xlu1 %v672_v61, %s2681_s4  ;;  %741 = vrot.lane.b32.xlu0 %v2801_v7, %s2681_s4 }
  0xc9   : > { %745 = vrot.lane.b32.xlu2 %v2804_v8, %s2681_s4 }
  0xca   : > { %v378_v62 = vpop.permute.xlu1 %377  ;;  %v376_v63 = vpop.permute.xlu0 %375 }
  0xcb   : > { %442 = vst.msk [vmem:[#allocation2 + $0xd8] sm:$0xff] %vm264_vm2, %v378_v62  ;;  %v538_v31 = vpop.permute.xlu2 %537  ;;  %v686_v62 = vld [vmem:[%s2765_s28 + $0xa8] sm:$0x7f] }
  0xcc   : > { %464 = vst.msk [vmem:[#allocation2 + $0xdf] sm:$0x1] %vm450_vm4, %v2679_v27 }
  0xcd   : > { %441 = vst.msk [vmem:[#allocation2 + $0xd0] sm:$0xff] %vm264_vm2, %v376_v63  ;;  %v688_v63 = vld [vmem:[%s2765_s28 + $0xb8] sm:$0x7f] }
  0xce   : > { %623 = vst.msk [vmem:[#allocation2 + $0x38] sm:$0x7f] %vm618_vm7, %v538_v31 }
  0xd0   : > { %749 = vrot.lane.b32.xlu1 %v2813_v9, %s2681_s4  ;;  %747 = vrot.lane.b32.xlu0 %v674_v34, %s2681_s4 }
  0xd1   : > { %751 = vrot.lane.b32.xlu2 %v676_v36, %s2681_s4 }
  0xd2   : > { %v384_v38 = vpop.permute.xlu1 %383  ;;  %v382_v40 = vpop.permute.xlu0 %381 }
  0xd3   : > { %445 = vst.msk [vmem:[#allocation2 + $0xf0] sm:$0xff] %vm264_vm2, %v384_v38  ;;  %v544_v41 = vpop.permute.xlu2 %543  ;;  %v690_v38 = vld [vmem:[%s2765_s28 + $0xc8] sm:$0x7f] }
  0xd4   : > { %444 = vst.msk [vmem:[#allocation2 + $0xe8] sm:$0xff] %vm264_vm2, %v382_v40  ;;  %vm1264_vm2 = vcmask 228544  }
  0xd5   : > { %465 = vst.msk [vmem:[#allocation2 + $0xef] sm:$0x1] %vm450_vm4, %v2679_v27  ;;  %vm1649_vm4 = vcmask 294144  }
  0xd6   : > { %626 = vst.msk [vmem:[#allocation2 + $0x50] sm:$0xff] %vm447_vm5, %v544_v41 }
  0xd7   : > { %654 = vst.msk [vmem:[#allocation2 + $0x50] sm:$0x1] %vm648_vm6, %v2679_v27 }
  0xd8   : > { %755 = vrot.lane.b32.xlu1 %v678_v44, %s2681_s4  ;;  %753 = vrot.lane.b32.xlu0 %v2831_v13, %s2681_s4 }
  0xd9   : > { %757 = vrot.lane.b32.xlu2 %v2834_v14, %s2681_s4 }
  0xda   : > { %v530_v45 = vpop.permute.xlu1 %529  ;;  %v528_v48 = vpop.permute.xlu0 %527 }
  0xdb   : > { %619 = vst.msk [vmem:[#allocation2 + $0x18] sm:$0x7f] %vm618_vm7, %v530_v45  ;;  %v550_v49 = vpop.permute.xlu2 %549  ;;  %v692_v45 = vld [vmem:[%s2765_s28 + $0xd8] sm:$0x7f] }
  0xdc   : > { %617 = vst.msk [vmem:[#allocation2 + $0x10] sm:$0xff] %vm447_vm5, %v528_v48  ;;  %v694_v48 = vld [vmem:[%s2765_s28 + $0xe8] sm:$0x7f] }
  0xdd   : > { %650 = vst.msk [vmem:[#allocation2 + $0x10] sm:$0x1] %vm648_vm6, %v2679_v27 }
  0xde   : > { %629 = vst.msk [vmem:[#allocation2 + $0x68] sm:$0x7f] %vm618_vm7, %v550_v49 }
  0xe0   : > { %761 = vrot.lane.b32.xlu1 %v2843_v15, %s2681_s4  ;;  %759 = vrot.lane.b32.xlu0 %v680_v50, %s2681_s4 }
  0xe1   : > { %763 = vrot.lane.b32.xlu2 %v682_v51, %s2681_s4 }
  0xe2   : > { %v536_v52 = vpop.permute.xlu1 %535  ;;  %v534_v54 = vpop.permute.xlu0 %533 }
  0xe3   : > { %622 = vst.msk [vmem:[#allocation2 + $0x30] sm:$0xff] %vm447_vm5, %v536_v52  ;;  %v556_v56 = vpop.permute.xlu2 %555  ;;  %v696_v52 = vld [vmem:[%s2765_s28 + $0xf8] sm:$0x7f] }
  0xe4   : > { %652 = vst.msk [vmem:[#allocation2 + $0x30] sm:$0x1] %vm648_vm6, %v2679_v27 }
  0xe5   : > { %621 = vst.msk [vmem:[#allocation2 + $0x28] sm:$0x7f] %vm618_vm7, %v534_v54  ;;  %v3283_v54 = vld [vmem:[%s2765_s28 + $0xf0] sm:$0xff] }
  0xe6   : > { %632 = vst.msk [vmem:[#allocation2 + $0x80] sm:$0xff] %vm447_vm5, %v556_v56 }
  0xe7   : > { %657 = vst.msk [vmem:[#allocation2 + $0x80] sm:$0x1] %vm648_vm6, %v2679_v27 }
  0xe8   : > { %767 = vrot.lane.b32.xlu1 %v684_v57, %s2681_s4  ;;  %765 = vrot.lane.b32.xlu0 %v2861_v19, %s2681_s4 }
  0xe9   : > { %769 = vrot.lane.b32.xlu2 %v2864_v20, %s2681_s4 }
  0xea   : > { %v542_v58 = vpop.permute.xlu1 %541  ;;  %v540_v59 = vpop.permute.xlu0 %539 }
  0xeb   : > { %625 = vst.msk [vmem:[#allocation2 + $0x48] sm:$0x7f] %vm618_vm7, %v542_v58  ;;  %v562_v61 = vpop.permute.xlu2 %561 }
  0xec   : > { %624 = vst.msk [vmem:[#allocation2 + $0x40] sm:$0xff] %vm447_vm5, %v540_v59 }
  0xed   : > { %653 = vst.msk [vmem:[#allocation2 + $0x40] sm:$0x1] %vm648_vm6, %v2679_v27 }
  0xee   : > { %635 = vst.msk [vmem:[#allocation2 + $0x98] sm:$0x7f] %vm618_vm7, %v562_v61 }
  0xf0   : > { %773 = vrot.lane.b32.xlu1 %v2873_v21, %s2681_s4  ;;  %771 = vrot.lane.b32.xlu0 %v686_v62, %s2681_s4  ;;  %v890_v62 = vld [vmem:[%s2765_s28 + $0xf8] sm:$0xff] }
  0xf1   : > { %775 = vrot.lane.b32.xlu2 %v688_v63, %s2681_s4  ;;  %v1070_v63 = vld [vmem:[%s2765_s28 + $0x9] sm:$0x7f] }
  0xf2   : > { %v548_v31 = vpop.permute.xlu1 %547  ;;  %v546_v34 = vpop.permute.xlu0 %545 }
  0xf3   : > { %628 = vst.msk [vmem:[#allocation2 + $0x60] sm:$0xff] %vm447_vm5, %v548_v31  ;;  %v568_v36 = vpop.permute.xlu2 %567 }
  0xf4   : > { %655 = vst.msk [vmem:[#allocation2 + $0x60] sm:$0x1] %vm648_vm6, %v2679_v27 }
  0xf5   : > { %627 = vst.msk [vmem:[#allocation2 + $0x58] sm:$0x7f] %vm618_vm7, %v546_v34  ;;  %v1072_v34 = vld [vmem:[%s2765_s28 + $0x19] sm:$0x7f] }
  0xf6   : > { %638 = vst.msk [vmem:[#allocation2 + $0xb0] sm:$0xff] %vm447_vm5, %v568_v36 }
  0xf7   : > { %660 = vst.msk [vmem:[#allocation2 + $0xb0] sm:$0x1] %vm648_vm6, %v2679_v27 }
  0xf8   : > { %779 = vrot.lane.b32.xlu1 %v690_v38, %s2681_s4  ;;  %777 = vrot.lane.b32.xlu0 %v2891_v25, %s2681_s4 }
  0xf9   : > { %781 = vrot.lane.b32.xlu2 %v2894_v26, %s2681_s4 }
  0xfa   : > { %v554_v40 = vpop.permute.xlu1 %553  ;;  %v552_v41 = vpop.permute.xlu0 %551 }
  0xfb   : > { %631 = vst.msk [vmem:[#allocation2 + $0x78] sm:$0x7f] %vm618_vm7, %v554_v40  ;;  %v574_v44 = vpop.permute.xlu2 %573  ;;  %v1074_v40 = vld [vmem:[%s2765_s28 + $0x29] sm:$0x7f] }
  0xfc   : > { %630 = vst.msk [vmem:[#allocation2 + $0x70] sm:$0xff] %vm447_vm5, %v552_v41  ;;  %v1076_v41 = vld [vmem:[%s2765_s28 + $0x39] sm:$0x7f] }
  0xfd   : > { %656 = vst.msk [vmem:[#allocation2 + $0x70] sm:$0x1] %vm648_vm6, %v2679_v27 }
  0xfe   : > { %641 = vst.msk [vmem:[#allocation2 + $0xc8] sm:$0x7f] %vm618_vm7, %v574_v44 }
 0x100   : > { %785 = vrot.lane.b32.xlu1 %v2911_v28, %s2681_s4  ;;  %783 = vrot.lane.b32.xlu0 %v692_v45, %s2681_s4  ;;  %v1078_v45 = vld [vmem:[%s2765_s28 + $0x49] sm:$0x7f] }
 0x101   : > { %787 = vrot.lane.b32.xlu2 %v694_v48, %s2681_s4 }
 0x102   : > { %v560_v49 = vpop.permute.xlu1 %559  ;;  %v558_v50 = vpop.permute.xlu0 %557 }
 0x103   : > { %634 = vst.msk [vmem:[#allocation2 + $0x90] sm:$0xff] %vm447_vm5, %v560_v49  ;;  %v580_v51 = vpop.permute.xlu2 %579 }
 0x104   : > { %658 = vst.msk [vmem:[#allocation2 + $0x90] sm:$0x1] %vm648_vm6, %v2679_v27 }
 0x105   : > { %633 = vst.msk [vmem:[#allocation2 + $0x88] sm:$0x7f] %vm618_vm7, %v558_v50  ;;  %v1080_v50 = vld [vmem:[%s2765_s28 + $0x59] sm:$0x7f] }
 0x106   : > { %644 = vst.msk [vmem:[#allocation2 + $0xe0] sm:$0xff] %vm447_vm5, %v580_v51  ;;  %v1082_v51 = vld [vmem:[%s2765_s28 + $0x69] sm:$0x7f] }
 0x107   : > { %663 = vst.msk [vmem:[#allocation2 + $0xe0] sm:$0x1] %vm648_vm6, %v2679_v27 }
 0x108   : > { %791 = vrot.lane.b32.xlu1 %v696_v52, %s2681_s4  ;;  %789 = vrot.lane.b32.xlu0 %v3283_v54, %s2681_s4 }
 0x109   : > { %923 = vrot.lane.b32.xlu2 %v2771_v1, %s2682_s5 }
 0x10a   : > { %v566_v56 = vpop.permute.xlu1 %565  ;;  %v564_v57 = vpop.permute.xlu0 %563 }
 0x10b   : > { %637 = vst.msk [vmem:[#allocation2 + $0xa8] sm:$0x7f] %vm618_vm7, %v566_v56  ;;  %v586_v58 = vpop.permute.xlu2 %585 }
 0x10c   : > { %636 = vst.msk [vmem:[#allocation2 + $0xa0] sm:$0xff] %vm447_vm5, %v564_v57 }
 0x10d   : > { %659 = vst.msk [vmem:[#allocation2 + $0xa0] sm:$0x1] %vm648_vm6, %v2679_v27 }
 0x10e   : > { %647 = vst.msk [vmem:[#allocation2 + $0xf8] sm:$0x7f] %vm618_vm7, %v586_v58  ;;  %v1086_v58 = vld [vmem:[%s2765_s28 + $0x89] sm:$0x7f] }
 0x110   : > { %927 = vrot.lane.b32.xlu1 %v2768_v0, %s2682_s5  ;;  %925 = vrot.lane.b32.xlu0 %v2786_v4, %s2682_s5 }
 0x111   : > { %929 = vrot.lane.b32.xlu2 %v2783_v3, %s2682_s5 }
 0x112   : > { %v572_v1 = vpop.permute.xlu1 %571  ;;  %v570_v59 = vpop.permute.xlu0 %569 }
 0x113   : > { %640 = vst.msk [vmem:[#allocation2 + $0xc0] sm:$0xff] %vm447_vm5, %v572_v1  ;;  %v734_v61 = vpop.permute.xlu2 %733  ;;  %v1088_v1 = vld [vmem:[%s2765_s28 + $0x99] sm:$0x7f] }
 0x114   : > { %661 = vst.msk [vmem:[#allocation2 + $0xc0] sm:$0x1] %vm648_vm6, %v2679_v27 }
 0x115   : > { %639 = vst.msk [vmem:[#allocation2 + $0xb8] sm:$0x7f] %vm618_vm7, %v570_v59 }
 0x116   : > { %829 = vst.msk [vmem:[#allocation2 + $0x11] sm:$0xff] %vm825_vm8, %v734_v61  ;;  %v1090_v61 = vld [vmem:[%s2765_s28 + $0xa9] sm:$0x7f] }
 0x118   : > { %933 = vrot.lane.b32.xlu1 %v2789_v5, %s2682_s5  ;;  %931 = vrot.lane.b32.xlu0 %v2778_v2, %s2682_s5 }
 0x119   : > { %935 = vrot.lane.b32.xlu2 %v2801_v7, %s2682_s5 }
 0x11a   : > { %v578_v0 = vpop.permute.xlu1 %577  ;;  %v576_v3 = vpop.permute.xlu0 %575 }
 0x11b   : > { %643 = vst.msk [vmem:[#allocation2 + $0xd8] sm:$0x7f] %vm618_vm7, %v578_v0  ;;  %v740_v4 = vpop.permute.xlu2 %739 }
 0x11c   : > { %642 = vst.msk [vmem:[#allocation2 + $0xd0] sm:$0xff] %vm447_vm5, %v576_v3 }
 0x11d   : > { %662 = vst.msk [vmem:[#allocation2 + $0xd0] sm:$0x1] %vm648_vm6, %v2679_v27 }
 0x11e   : > { %832 = vst.msk [vmem:[#allocation2 + $0x29] sm:$0x7f] %vm827_vm9, %v740_v4  ;;  %v2452_v4 = vld [vmem:[%s2765_s28 + $0x10] sm:$0xff] }
 0x120   : > { %939 = vrot.lane.b32.xlu1 %v2804_v8, %s2682_s5  ;;  %937 = vrot.lane.b32.xlu0 %v2798_v6, %s2682_s5 }
 0x121   : > { %941 = vrot.lane.b32.xlu2 %v2816_v10, %s2682_s5 }
 0x122   : > { %v584_v2 = vpop.permute.xlu1 %583  ;;  %v582_v5 = vpop.permute.xlu0 %581 }
 0x123   : > { %646 = vst.msk [vmem:[#allocation2 + $0xf0] sm:$0xff] %vm447_vm5, %v584_v2  ;;  %v746_v7 = vpop.permute.xlu2 %745  ;;  %v2482_v2 = vld [vmem:[%s2765_s28 + $0x11] sm:$0xff]  ;;  %vm1436_vm5 = vcmask 227520  }
 0x124   : > { %664 = vst.msk [vmem:[#allocation2 + $0xf0] sm:$0x1] %vm648_vm6, %v2679_v27  ;;  %vm1652_vm6 = vcmask 286976  }
 0x125   : > { %645 = vst.msk [vmem:[#allocation2 + $0xe8] sm:$0x7f] %vm618_vm7, %v582_v5  ;;  %vm1887_vm7 = vcmask 293888  }
 0x126   : > { %835 = vst.msk [vmem:[#allocation2 + $0x41] sm:$0xff] %vm825_vm8, %v746_v7  ;;  %v2453_v7 = vld [vmem:[%s2765_s28 + $0x18] sm:$0xff] }
 0x128   : > { %945 = vrot.lane.b32.xlu1 %v2819_v11, %s2682_s5  ;;  %943 = vrot.lane.b32.xlu0 %v2813_v9, %s2682_s5 }
 0x129   : > { %947 = vrot.lane.b32.xlu2 %v2831_v13, %s2682_s5 }
 0x12a   : > { %v732_v6 = vpop.permute.xlu1 %731  ;;  %v730_v8 = vpop.permute.xlu0 %729 }
 0x12b   : > { %828 = vst.msk [vmem:[#allocation2 + $0x9] sm:$0x7f] %vm827_vm9, %v732_v6  ;;  %v752_v10 = vpop.permute.xlu2 %751  ;;  %v2423_v6 = vld [vmem:[%s2765_s28 + $0x18] sm:$0x7f] }
 0x12c   : > { %826 = vst.msk [vmem:[#allocation2 + $0x1] sm:$0xff] %vm825_vm8, %v730_v8  ;;  %v2483_v8 = vld [vmem:[%s2765_s28 + $0x19] sm:$0x7f] }
 0x12d   : > { %838 = vst.msk [vmem:[#allocation2 + $0x59] sm:$0x7f] %vm827_vm9, %v752_v10 }
 0x130   : > { %951 = vrot.lane.b32.xlu1 %v2834_v14, %s2682_s5  ;;  %949 = vrot.lane.b32.xlu0 %v2828_v12, %s2682_s5 }
 0x131   : > { %953 = vrot.lane.b32.xlu2 %v2846_v16, %s2682_s5 }
 0x132   : > { %v738_v9 = vpop.permute.xlu1 %737  ;;  %v736_v11 = vpop.permute.xlu0 %735 }
 0x133   : > { %831 = vst.msk [vmem:[#allocation2 + $0x21] sm:$0xff] %vm825_vm8, %v738_v9  ;;  %v758_v13 = vpop.permute.xlu2 %757 }
 0x134   : > { %830 = vst.msk [vmem:[#allocation2 + $0x19] sm:$0x7f] %vm827_vm9, %v736_v11 }
 0x135   : > { %841 = vst.msk [vmem:[#allocation2 + $0x71] sm:$0xff] %vm825_vm8, %v758_v13  ;;  %v2430_v13 = vld [vmem:[%s2765_s28 + $0x50] sm:$0xff] }
 0x138   : > { %957 = vrot.lane.b32.xlu1 %v2849_v17, %s2682_s5  ;;  %955 = vrot.lane.b32.xlu0 %v2843_v15, %s2682_s5 }
 0x139   : > { %959 = vrot.lane.b32.xlu2 %v2861_v19, %s2682_s5 }
 0x13a   : > { %v744_v12 = vpop.permute.xlu1 %743  ;;  %v742_v14 = vpop.permute.xlu0 %741 }
 0x13b   : > { %834 = vst.msk [vmem:[#allocation2 + $0x39] sm:$0x7f] %vm827_vm9, %v744_v12  ;;  %v764_v16 = vpop.permute.xlu2 %763  ;;  %v2424_v12 = vld [vmem:[%s2765_s28 + $0x20] sm:$0xff] }
 0x13c   : > { %833 = vst.msk [vmem:[#allocation2 + $0x31] sm:$0xff] %vm825_vm8, %v742_v14 }
 0x13d   : > { %844 = vst.msk [vmem:[#allocation2 + $0x89] sm:$0x7f] %vm827_vm9, %v764_v16 }
 0x140   : > { %963 = vrot.lane.b32.xlu1 %v2864_v20, %s2682_s5  ;;  %961 = vrot.lane.b32.xlu0 %v2858_v18, %s2682_s5 }
 0x141   : > { %965 = vrot.lane.b32.xlu2 %v2876_v22, %s2682_s5 }
 0x142   : > { %v750_v15 = vpop.permute.xlu1 %749  ;;  %v748_v17 = vpop.permute.xlu0 %747 }
 0x143   : > { %837 = vst.msk [vmem:[#allocation2 + $0x51] sm:$0xff] %vm825_vm8, %v750_v15  ;;  %v770_v19 = vpop.permute.xlu2 %769 }
 0x144   : > { %836 = vst.msk [vmem:[#allocation2 + $0x49] sm:$0x7f] %vm827_vm9, %v748_v17  ;;  %v2484_v17 = vld [vmem:[%s2765_s28 + $0x21] sm:$0xff] }
 0x145   : > { %847 = vst.msk [vmem:[#allocation2 + $0xa1] sm:$0xff] %vm825_vm8, %v770_v19  ;;  %v2490_v19 = vld [vmem:[%s2765_s28 + $0x51] sm:$0xff] }
 0x148   : > { %969 = vrot.lane.b32.xlu1 %v2879_v23, %s2682_s5  ;;  %967 = vrot.lane.b32.xlu0 %v2873_v21, %s2682_s5 }
 0x149   : > { %971 = vrot.lane.b32.xlu2 %v2891_v25, %s2682_s5 }
 0x14a   : > { %v756_v18 = vpop.permute.xlu1 %755  ;;  %v754_v20 = vpop.permute.xlu0 %753 }
 0x14b   : > { %840 = vst.msk [vmem:[#allocation2 + $0x69] sm:$0x7f] %vm827_vm9, %v756_v18  ;;  %v776_v22 = vpop.permute.xlu2 %775 }
 0x14c   : > { %839 = vst.msk [vmem:[#allocation2 + $0x61] sm:$0xff] %vm825_vm8, %v754_v20 }
 0x14d   : > { %850 = vst.msk [vmem:[#allocation2 + $0xb9] sm:$0x7f] %vm827_vm9, %v776_v22 }
 0x150   : > { %975 = vrot.lane.b32.xlu1 %v2894_v26, %s2682_s5  ;;  %973 = vrot.lane.b32.xlu0 %v2888_v24, %s2682_s5 }
 0x151   : > { %977 = vrot.lane.b32.xlu2 %v2914_v29, %s2682_s5 }
 0x152   : > { %v762_v21 = vpop.permute.xlu1 %761  ;;  %v760_v23 = vpop.permute.xlu0 %759 }
 0x153   : > { %843 = vst.msk [vmem:[#allocation2 + $0x81] sm:$0xff] %vm825_vm8, %v762_v21  ;;  %v782_v25 = vpop.permute.xlu2 %781  ;;  %v2431_v21 = vld [vmem:[%s2765_s28 + $0x58] sm:$0x7f] }
 0x154   : > { %842 = vst.msk [vmem:[#allocation2 + $0x79] sm:$0x7f] %vm827_vm9, %v760_v23  ;;  %v2425_v23 = vld [vmem:[%s2765_s28 + $0x28] sm:$0x7f] }
 0x155   : > { %853 = vst.msk [vmem:[#allocation2 + $0xd1] sm:$0xff] %vm825_vm8, %v782_v25  ;;  %v2455_v25 = vld [vmem:[%s2765_s28 + $0x28] sm:$0xff] }
 0x158   : > { %981 = vrot.lane.b32.xlu1 %v2919_v30, %s2682_s5  ;;  %979 = vrot.lane.b32.xlu0 %v2911_v28, %s2682_s5 }
 0x159   : > { %983 = vrot.lane.b32.xlu2 %v3283_v54, %s2682_s5  ;;  %v1084_v54 = vld [vmem:[%s2765_s28 + $0x79] sm:$0x7f] }
 0x15a   : > { %v768_v24 = vpop.permute.xlu1 %767  ;;  %v766_v26 = vpop.permute.xlu0 %765 }
 0x15b   : > { %846 = vst.msk [vmem:[#allocation2 + $0x99] sm:$0x7f] %vm827_vm9, %v768_v24  ;;  %v788_v29 = vpop.permute.xlu2 %787 }
 0x15c   : > { %845 = vst.msk [vmem:[#allocation2 + $0x91] sm:$0xff] %vm825_vm8, %v766_v26 }
 0x15d   : > { %856 = vst.msk [vmem:[#allocation2 + $0xe9] sm:$0x7f] %vm827_vm9, %v788_v29 }
 0x160   : > { %1133 = vrot.lane.b32.xlu1 %v2943_v32, %s2683_s6  ;;  %985 = vrot.lane.b32.xlu0 %v890_v62, %s2682_s5  ;;  %v2438_v62 = vld [vmem:[%s2765_s28 + $0x90] sm:$0xff] }
 0x161   : > { %1135 = vrot.lane.b32.xlu2 %v1070_v63, %s2683_s6  ;;  %v2461_v63 = vld [vmem:[%s2765_s28 + $0x58] sm:$0xff] }
 0x162   : > { %v774_v28 = vpop.permute.xlu1 %773  ;;  %v772_v30 = vpop.permute.xlu0 %771 }
 0x163   : > { %849 = vst.msk [vmem:[#allocation2 + $0xb1] sm:$0xff] %vm825_vm8, %v774_v28  ;;  %v924_v31 = vpop.permute.xlu2 %923  ;;  %v2485_v28 = vld [vmem:[%s2765_s28 + $0x29] sm:$0x7f] }
 0x164   : > { %848 = vst.msk [vmem:[#allocation2 + $0xa9] sm:$0x7f] %vm827_vm9, %v772_v30 }
 0x165   : > { %1020 = vst.msk [vmem:[#allocation2] sm:$0xff] %vm1019_vm10, %v924_v31 }
 0x168   : > { %1139 = vrot.lane.b32.xlu1 %v1072_v34, %s2683_s6  ;;  %1137 = vrot.lane.b32.xlu0 %v2948_v33, %s2683_s6 }
 0x169   : > { %1141 = vrot.lane.b32.xlu2 %v2971_v35, %s2683_s6 }
 0x16a   : > { %v780_v32 = vpop.permute.xlu1 %779  ;;  %v778_v36 = vpop.permute.xlu0 %777 }
 0x16b   : > { %852 = vst.msk [vmem:[#allocation2 + $0xc9] sm:$0x7f] %vm827_vm9, %v780_v32  ;;  %v930_v38 = vpop.permute.xlu2 %929  ;;  %v2491_v32 = vld [vmem:[%s2765_s28 + $0x59] sm:$0x7f] }
 0x16c   : > { %851 = vst.msk [vmem:[#allocation2 + $0xc1] sm:$0xff] %vm825_vm8, %v778_v36  ;;  %v2498_v36 = vld [vmem:[%s2765_s28 + $0x91] sm:$0xff] }
 0x16d   : > { %1023 = vst.msk [vmem:[#allocation2 + $0x18] sm:$0xff] %vm1019_vm10, %v930_v38 }
 0x16e   : > { %1054 = vst.msk [vmem:[#allocation2 + $0x1f] sm:$0x1] %vm1052_vm11, %v2679_v27 }
 0x170   : > { %1145 = vrot.lane.b32.xlu1 %v2996_v42, %s2683_s6  ;;  %1143 = vrot.lane.b32.xlu0 %v1074_v40, %s2683_s6 }
 0x171   : > { %1147 = vrot.lane.b32.xlu2 %v1076_v41, %s2683_s6 }
 0x172   : > { %v786_v33 = vpop.permute.xlu1 %785  ;;  %v784_v35 = vpop.permute.xlu0 %783 }
 0x173   : > { %855 = vst.msk [vmem:[#allocation2 + $0xe1] sm:$0xff] %vm825_vm8, %v786_v33  ;;  %v936_v44 = vpop.permute.xlu2 %935  ;;  %v2432_v33 = vld [vmem:[%s2765_s28 + $0x60] sm:$0xff] }
 0x174   : > { %854 = vst.msk [vmem:[#allocation2 + $0xd9] sm:$0x7f] %vm827_vm9, %v784_v35  ;;  %v2426_v35 = vld [vmem:[%s2765_s28 + $0x30] sm:$0xff] }
 0x175   : > { %1026 = vst.msk [vmem:[#allocation2 + $0x30] sm:$0xff] %vm1019_vm10, %v936_v44 }
 0x178   : > { %1151 = vrot.lane.b32.xlu1 %v1078_v45, %s2683_s6  ;;  %1149 = vrot.lane.b32.xlu0 %v3000_v43, %s2683_s6 }
 0x179   : > { %1153 = vrot.lane.b32.xlu2 %v3021_v47, %s2683_s6 }
 0x17a   : > { %v792_v42 = vpop.permute.xlu1 %791  ;;  %v790_v48 = vpop.permute.xlu0 %789 }
 0x17b   : > { %858 = vst.msk [vmem:[#allocation2 + $0xf9] sm:$0x7f] %vm827_vm9, %v792_v42  ;;  %v942_v49 = vpop.permute.xlu2 %941 }
 0x17c   : > { %857 = vst.msk [vmem:[#allocation2 + $0xf1] sm:$0xff] %vm825_vm8, %v790_v48  ;;  %v2439_v48 = vld [vmem:[%s2765_s28 + $0x98] sm:$0x7f]  ;;  %vm1820_vm8 = vcmask 293120  }
 0x17d   : > { %1029 = vst.msk [vmem:[#allocation2 + $0x48] sm:$0xff] %vm1019_vm10, %v942_v49  ;;  %v2486_v49 = vld [vmem:[%s2765_s28 + $0x31] sm:$0xff] }
 0x17e   : > { %1057 = vst.msk [vmem:[#allocation2 + $0x4f] sm:$0x1] %vm1052_vm11, %v2679_v27 }
 0x180   : > { %1157 = vrot.lane.b32.xlu1 %v3047_v53, %s2683_s6  ;;  %1155 = vrot.lane.b32.xlu0 %v1080_v50, %s2683_s6 }
 0x181   : > { %1159 = vrot.lane.b32.xlu2 %v1082_v51, %s2683_s6 }
 0x182   : > { %v928_v43 = vpop.permute.xlu1 %927  ;;  %v926_v47 = vpop.permute.xlu0 %925 }
 0x183   : > { %1022 = vst.msk [vmem:[#allocation2 + $0x10] sm:$0xff] %vm1019_vm10, %v928_v43  ;;  %v948_v52 = vpop.permute.xlu2 %947 }
 0x184   : > { %1021 = vst.msk [vmem:[#allocation2 + $0x8] sm:$0xff] %vm1019_vm10, %v926_v47  ;;  %v2469_v47 = vld [vmem:[%s2765_s28 + $0x98] sm:$0xff] }
 0x185   : > { %1053 = vst.msk [vmem:[#allocation2 + $0xf] sm:$0x1] %vm1052_vm11, %v2679_v27 }
 0x186   : > { %1032 = vst.msk [vmem:[#allocation2 + $0x60] sm:$0xff] %vm1019_vm10, %v948_v52  ;;  %v2492_v52 = vld [vmem:[%s2765_s28 + $0x61] sm:$0xff] }
 0x188   : > { %1163 = vrot.lane.b32.xlu1 %v1084_v54, %s2683_s6  ;;  %1161 = vrot.lane.b32.xlu0 %v3052_v55, %s2683_s6  ;;  %v2499_v54 = vld [vmem:[%s2765_s28 + $0x99] sm:$0x7f] }
 0x189   : > { %1165 = vrot.lane.b32.xlu2 %v3064_v60, %s2683_s6 }
 0x18a   : > { %v934_v53 = vpop.permute.xlu1 %933  ;;  %v932_v56 = vpop.permute.xlu0 %931 }
 0x18b   : > { %1025 = vst.msk [vmem:[#allocation2 + $0x28] sm:$0xff] %vm1019_vm10, %v934_v53  ;;  %v954_v57 = vpop.permute.xlu2 %953 }
 0x18c   : > { %1055 = vst.msk [vmem:[#allocation2 + $0x2f] sm:$0x1] %vm1052_vm11, %v2679_v27 }
 0x18d   : > { %1024 = vst.msk [vmem:[#allocation2 + $0x20] sm:$0xff] %vm1019_vm10, %v932_v56 }
 0x18e   : > { %1035 = vst.msk [vmem:[#allocation2 + $0x78] sm:$0xff] %vm1019_vm10, %v954_v57 }
 0x18f   : > { %1060 = vst.msk [vmem:[#allocation2 + $0x7f] sm:$0x1] %vm1052_vm11, %v2679_v27 }
 0x190   : > { %1169 = vrot.lane.b32.xlu1 %v3082_v37, %s2683_s6  ;;  %1167 = vrot.lane.b32.xlu0 %v1086_v58, %s2683_s6  ;;  %v2433_v58 = vld [vmem:[%s2765_s28 + $0x68] sm:$0x7f] }
 0x191   : > { %1171 = vrot.lane.b32.xlu2 %v1088_v1, %s2683_s6  ;;  %v2427_v1 = vld [vmem:[%s2765_s28 + $0x38] sm:$0x7f] }
 0x192   : > { %v940_v55 = vpop.permute.xlu1 %939  ;;  %v938_v60 = vpop.permute.xlu0 %937 }
 0x193   : > { %1028 = vst.msk [vmem:[#allocation2 + $0x40] sm:$0xff] %vm1019_vm10, %v940_v55  ;;  %v960_v59 = vpop.permute.xlu2 %959  ;;  %v3599_v55 = vld [vmem:[%s2765_s28 + $0xc1] sm:$0xff] }
 0x194   : > { %1027 = vst.msk [vmem:[#allocation2 + $0x38] sm:$0xff] %vm1019_vm10, %v938_v60 }
 0x195   : > { %1056 = vst.msk [vmem:[#allocation2 + $0x3f] sm:$0x1] %vm1052_vm11, %v2679_v27 }
 0x196   : > { %1038 = vst.msk [vmem:[#allocation2 + $0x90] sm:$0xff] %vm1019_vm10, %v960_v59 }
 0x198   : > { %1175 = vrot.lane.b32.xlu1 %v1090_v61, %s2683_s6  ;;  %1173 = vrot.lane.b32.xlu0 %v3088_v39, %s2683_s6 }
 0x199   : > { %1177 = vrot.lane.b32.xlu2 %v3104_v46, %s2683_s6 }
 0x19a   : > { %v946_v37 = vpop.permute.xlu1 %945  ;;  %v944_v0 = vpop.permute.xlu0 %943 }
 0x19b   : > { %1031 = vst.msk [vmem:[#allocation2 + $0x58] sm:$0xff] %vm1019_vm10, %v946_v37  ;;  %v966_v3 = vpop.permute.xlu2 %965  ;;  %v1094_v37 = vld [vmem:[%s2765_s28 + $0xc9] sm:$0x7f] }
 0x19c   : > { %1058 = vst.msk [vmem:[#allocation2 + $0x5f] sm:$0x1] %vm1052_vm11, %v2679_v27 }
 0x19d   : > { %1030 = vst.msk [vmem:[#allocation2 + $0x50] sm:$0xff] %vm1019_vm10, %v944_v0  ;;  %v2457_v0 = vld [vmem:[%s2765_s28 + $0x38] sm:$0xff] }
 0x19e   : > { %1041 = vst.msk [vmem:[#allocation2 + $0xa8] sm:$0xff] %vm1019_vm10, %v966_v3  ;;  %v1886_v3 = vld [vmem:[%s4182_s1 + $0x20] sm:$0xf] }
 0x19f   : > { %1063 = vst.msk [vmem:[#allocation2 + $0xaf] sm:$0x1] %vm1052_vm11, %v2679_v27  ;;  %2512 = vmatpush.msk.msra.mxu0 %vm1984_vm15, %v1886_v3  ;;  %2551 = vmatpush.msk.msra.mxu1 %vm1984_vm15, %v1886_v3 }
 0x1a0   : > { %1529 = vrot.lane.b32.xlu1 %v2452_v4, %s2684_s7  ;;  %1345 = vrot.lane.b32.xlu0 %v2452_v4, %s2685_s8  ;;  %v2463_v4 = vld [vmem:[%s2765_s28 + $0x68] sm:$0xff] }
 0x1a1   : > { %1729 = vrot.lane.b32.xlu2 %v2482_v2, %s2686_s9  ;;  %v1885_v2 = vld [vmem:[%s4182_s1 + $0x18] sm:$0xff]  ;;  %2552 = vmatpush.msk.msra.mxu2 %vm1984_vm15, %v1886_v3 }
 0x1a2   : > { %v952_v39 = vpop.permute.xlu1 %951  ;;  %v950_v46 = vpop.permute.xlu0 %949  ;;  %2553 = vmatpush.msk.msra.mxu3 %vm1984_vm15, %v1886_v3  ;;  %2000 = vmatpush.msra.mxu0 %v1885_v2 }
 0x1a3   : > { %1034 = vst.msk [vmem:[#allocation2 + $0x70] sm:$0xff] %vm1019_vm10, %v952_v39  ;;  %v972_v5 = vpop.permute.xlu2 %971  ;;  %v1884_v39 = vld [vmem:[%s4182_s1 + $0x10] sm:$0xff]  ;;  %2554 = vmatpush.msra.mxu1 %v1885_v2  ;;  %2555 = vmatpush.msra.mxu2 %v1885_v2 }
 0x1a4   : > { %1033 = vst.msk [vmem:[#allocation2 + $0x68] sm:$0xff] %vm1019_vm10, %v950_v46  ;;  %2001 = vmatpush.msra.mxu0 %v1884_v39  ;;  %2556 = vmatpush.msra.mxu3 %v1885_v2  ;;  %v2448_v2 = vld [vmem:[%s2765_s28 + $0xe0] sm:$0xff] }
 0x1a5   : > { %1059 = vst.msk [vmem:[#allocation2 + $0x6f] sm:$0x1] %vm1052_vm11, %v2679_v27  ;;  %2557 = vmatpush.msra.mxu1 %v1884_v39  ;;  %2558 = vmatpush.msra.mxu2 %v1884_v39 }
 0x1a6   : > { %1044 = vst.msk [vmem:[#allocation2 + $0xc0] sm:$0xff] %vm1019_vm10, %v972_v5  ;;  %2559 = vmatpush.msra.mxu3 %v1884_v39  ;;  %v2495_v39 = vld [vmem:[%s2765_s28 + $0x79] sm:$0x7f] }
 0x1a8   : > { %1531 = vrot.lane.b32.xlu1 %v2453_v7, %s2684_s7  ;;  %1347 = vrot.lane.b32.xlu0 %v2423_v6, %s2685_s8  ;;  %v1883_v7 = vld [vmem:[%s4182_s1 + $0x8] sm:$0xff] }
 0x1a9   : > { %1731 = vrot.lane.b32.xlu2 %v2483_v8, %s2686_s9  ;;  %v2446_v8 = vld [vmem:[%s2765_s28 + $0xd0] sm:$0xff]  ;;  %2002 = vmatpush.msra.mxu0 %v1883_v7 }
 0x1aa   : > { %v958_v10 = vpop.permute.xlu1 %957  ;;  %v956_v9 = vpop.permute.xlu0 %955  ;;  %2560 = vmatpush.msra.mxu1 %v1883_v7  ;;  %2561 = vmatpush.msra.mxu2 %v1883_v7 }
 0x1ab   : > { %1037 = vst.msk [vmem:[#allocation2 + $0x88] sm:$0xff] %vm1019_vm10, %v958_v10  ;;  %v978_v11 = vpop.permute.xlu2 %977  ;;  %v2440_v10 = vld [vmem:[%s2765_s28 + $0xa0] sm:$0xff]  ;;  %2562 = vmatpush.msra.mxu3 %v1883_v7 }
 0x1ac   : > { %1061 = vst.msk [vmem:[#allocation2 + $0x8f] sm:$0x1] %vm1052_vm11, %v2679_v27 }
 0x1ad   : > { %1036 = vst.msk [vmem:[#allocation2 + $0x80] sm:$0xff] %vm1019_vm10, %v956_v9  ;;  %v1882_v9 = vld [vmem:[%s4182_s1] sm:$0xff] }
 0x1ae   : > { %1047 = vst.msk [vmem:[#allocation2 + $0xd8] sm:$0xff] %vm1019_vm10, %v978_v11  ;;  %v2487_v11 = vld [vmem:[%s2765_s28 + $0x39] sm:$0x7f]  ;;  %2003 = vmatpush.msra.mxu0 %v1882_v9  ;;  %2563 = vmatpush.msra.mxu1 %v1882_v9 }
 0x1af   : > { %1066 = vst.msk [vmem:[#allocation2 + $0xdf] sm:$0x1] %vm1052_vm11, %v2679_v27  ;;  %2564 = vmatpush.msra.mxu2 %v1882_v9  ;;  %2565 = vmatpush.msra.mxu3 %v1882_v9 }
 0x1b0   : > { %1361 = vrot.lane.b32.xlu1 %v2430_v13, %s2685_s8  ;;  %1349 = vrot.lane.b32.xlu0 %v2424_v12, %s2685_s8 }
 0x1b1   : > { %1533 = vrot.lane.b32.xlu2 %v2424_v12, %s2684_s7 }
 0x1b2   : > { %v964_v14 = vpop.permute.xlu1 %963  ;;  %v962_v16 = vpop.permute.xlu0 %961 }
 0x1b3   : > { %1040 = vst.msk [vmem:[#allocation2 + $0xa0] sm:$0xff] %vm1019_vm10, %v964_v14  ;;  %v984_v15 = vpop.permute.xlu2 %983 }
 0x1b4   : > { %1039 = vst.msk [vmem:[#allocation2 + $0x98] sm:$0xff] %vm1019_vm10, %v962_v16  ;;  %v2493_v16 = vld [vmem:[%s2765_s28 + $0x69] sm:$0x7f] }
 0x1b5   : > { %1062 = vst.msk [vmem:[#allocation2 + $0x9f] sm:$0x1] %vm1052_vm11, %v2679_v27 }
 0x1b6   : > { %1050 = vst.msk [vmem:[#allocation2 + $0xf0] sm:$0xff] %vm1019_vm10, %v984_v15 }
 0x1b8   : > { %1733 = vrot.lane.b32.xlu1 %v2484_v17, %s2686_s9  ;;  %1545 = vrot.lane.b32.xlu0 %v2430_v13, %s2684_s7 }
 0x1b9   : > { %1745 = vrot.lane.b32.xlu2 %v2490_v19, %s2686_s9 }
 0x1ba   : > { %v970_v18 = vpop.permute.xlu1 %969  ;;  %v968_v20 = vpop.permute.xlu0 %967 }
 0x1bb   : > { %1043 = vst.msk [vmem:[#allocation2 + $0xb8] sm:$0xff] %vm1019_vm10, %v970_v18  ;;  %v1136_v22 = vpop.permute.xlu2 %1135  ;;  %v3656_v18 = vld [vmem:[%s2765_s28 + $0xd1] sm:$0xff] }
 0x1bc   : > { %1064 = vst.msk [vmem:[#allocation2 + $0xbf] sm:$0x1] %vm1052_vm11, %v2679_v27 }
 0x1bd   : > { %1042 = vst.msk [vmem:[#allocation2 + $0xb0] sm:$0xff] %vm1019_vm10, %v968_v20  ;;  %v2500_v20 = vld [vmem:[%s2765_s28 + $0xa1] sm:$0xff] }
 0x1be   : > { %1232 = vst.msk [vmem:[#allocation2 + $0x8] sm:$0x7f] %vm1231_vm12, %v1136_v22  ;;  %v2458_v22 = vld [vmem:[%s2765_s28 + $0x40] sm:$0xff] }
 0x1c0   : > { %1363 = vrot.lane.b32.xlu1 %v2431_v21, %s2685_s8  ;;  %1351 = vrot.lane.b32.xlu0 %v2425_v23, %s2685_s8 }
 0x1c1   : > { %1535 = vrot.lane.b32.xlu2 %v2455_v25, %s2684_s7 }
 0x1c2   : > { %v976_v24 = vpop.permute.xlu1 %975  ;;  %v974_v26 = vpop.permute.xlu0 %973 }
 0x1c3   : > { %1046 = vst.msk [vmem:[#allocation2 + $0xd0] sm:$0xff] %vm1019_vm10, %v976_v24  ;;  %v1142_v29 = vpop.permute.xlu2 %1141  ;;  %v2434_v24 = vld [vmem:[%s2765_s28 + $0x70] sm:$0xff] }
 0x1c4   : > { %1045 = vst.msk [vmem:[#allocation2 + $0xc8] sm:$0xff] %vm1019_vm10, %v974_v26 }
 0x1c5   : > { %1065 = vst.msk [vmem:[#allocation2 + $0xcf] sm:$0x1] %vm1052_vm11, %v2679_v27 }
 0x1c6   : > { %1235 = vst.msk [vmem:[#allocation2 + $0x20] sm:$0xff] %vm1229_vm13, %v1142_v29 }
 0x1c7   : > { %1270 = vst.msk [vmem:[#allocation2 + $0x20] sm:$0x1] %vm1267_vm14, %v2679_v27 }
 0x1c8   : > { %1377 = vrot.lane.b32.xlu1 %v2438_v62, %s2685_s8  ;;  %1547 = vrot.lane.b32.xlu0 %v2461_v63, %s2684_s7 }
 0x1c9   : > { %1735 = vrot.lane.b32.xlu2 %v2485_v28, %s2686_s9  ;;  %v2447_v28 = vld [vmem:[%s2765_s28 + $0xd8] sm:$0x7f] }
 0x1ca   : > { %v982_v30 = vpop.permute.xlu1 %981  ;;  %v980_v31 = vpop.permute.xlu0 %979 }
 0x1cb   : > { %1049 = vst.msk [vmem:[#allocation2 + $0xe8] sm:$0xff] %vm1019_vm10, %v982_v30  ;;  %v1148_v34 = vpop.permute.xlu2 %1147  ;;  %v2441_v30 = vld [vmem:[%s2765_s28 + $0xa8] sm:$0x7f] }
 0x1cc   : > { %1067 = vst.msk [vmem:[#allocation2 + $0xef] sm:$0x1] %vm1052_vm11, %v2679_v27 }
 0x1cd   : > { %1048 = vst.msk [vmem:[#allocation2 + $0xe0] sm:$0xff] %vm1019_vm10, %v980_v31  ;;  %v2488_v31 = vld [vmem:[%s2765_s28 + $0x41] sm:$0xff] }
 0x1ce   : > { %1238 = vst.msk [vmem:[#allocation2 + $0x38] sm:$0x7f] %vm1231_vm12, %v1148_v34 }
 0x1d0   : > { %1561 = vrot.lane.b32.xlu1 %v2438_v62, %s2684_s7  ;;  %1747 = vrot.lane.b32.xlu0 %v2491_v32, %s2686_s9 }
 0x1d1   : > { %1761 = vrot.lane.b32.xlu2 %v2498_v36, %s2686_s9 }
 0x1d2   : > { %v1134_v38 = vpop.permute.xlu1 %1133  ;;  %v986_v40 = vpop.permute.xlu0 %985 }
 0x1d3   : > { %1230 = vst.msk [vmem:[#allocation2] sm:$0xff] %vm1229_vm13, %v1134_v38  ;;  %v1154_v41 = vpop.permute.xlu2 %1153 }
 0x1d4   : > { %1268 = vst.msk [vmem:[#allocation2] sm:$0x1] %vm1267_vm14, %v2679_v27 }
 0x1d5   : > { %1051 = vst.msk [vmem:[#allocation2 + $0xf8] sm:$0xff] %vm1019_vm10, %v986_v40  ;;  %v2471_v40 = vld [vmem:[%s2765_s28 + $0xa8] sm:$0xff] }
 0x1d6   : > { %1068 = vst.msk [vmem:[#allocation2 + $0xff] sm:$0x1] %vm1052_vm11, %v2679_v27 }
 0x1d7   : > { %1241 = vst.msk [vmem:[#allocation2 + $0x50] sm:$0xff] %vm1229_vm13, %v1154_v41  ;;  %v2494_v41 = vld [vmem:[%s2765_s28 + $0x71] sm:$0xff] }
 0x1d8   : > { %1365 = vrot.lane.b32.xlu1 %v2432_v33, %s2685_s8  ;;  %1353 = vrot.lane.b32.xlu0 %v2426_v35, %s2685_s8  ;;  %1273 = vst.msk [vmem:[#allocation2 + $0x50] sm:$0x1] %vm1267_vm14, %v2679_v27 }
 0x1d9   : > { %1537 = vrot.lane.b32.xlu2 %v2426_v35, %s2684_s7 }
 0x1da   : > { %v1140_v44 = vpop.permute.xlu1 %1139  ;;  %v1138_v45 = vpop.permute.xlu0 %1137 }
 0x1db   : > { %1234 = vst.msk [vmem:[#allocation2 + $0x18] sm:$0x7f] %vm1231_vm12, %v1140_v44  ;;  %v1160_v42 = vpop.permute.xlu2 %1159 }
 0x1dc   : > { %1233 = vst.msk [vmem:[#allocation2 + $0x10] sm:$0xff] %vm1229_vm13, %v1138_v45 }
 0x1dd   : > { %1269 = vst.msk [vmem:[#allocation2 + $0x10] sm:$0x1] %vm1267_vm14, %v2679_v27 }
 0x1de   : > { %1244 = vst.msk [vmem:[#allocation2 + $0x68] sm:$0x7f] %vm1231_vm12, %v1160_v42  ;;  %v2507_v42 = vld [vmem:[%s2765_s28 + $0xd9] sm:$0x7f] }
 0x1e0   : > { %1379 = vrot.lane.b32.xlu1 %v2439_v48, %s2685_s8  ;;  %1549 = vrot.lane.b32.xlu0 %v2432_v33, %s2684_s7  ;;  %v2477_v33 = vld [vmem:[%s2765_s28 + $0xd8] sm:$0xff]  ;;  %v2501_v48 = vld [vmem:[%s2765_s28 + $0xa9] sm:$0x7f] }
 0x1e1   : > { %1737 = vrot.lane.b32.xlu2 %v2486_v49, %s2686_s9  ;;  %v2429_v49 = vld [vmem:[%s2765_s28 + $0x48] sm:$0x7f] }
 0x1e2   : > { %v1146_v50 = vpop.permute.xlu1 %1145  ;;  %v1144_v51 = vpop.permute.xlu0 %1143 }
 0x1e3   : > { %1237 = vst.msk [vmem:[#allocation2 + $0x30] sm:$0xff] %vm1229_vm13, %v1146_v50  ;;  %v1166_v43 = vpop.permute.xlu2 %1165 }
 0x1e4   : > { %1271 = vst.msk [vmem:[#allocation2 + $0x30] sm:$0x1] %vm1267_vm14, %v2679_v27 }
 0x1e5   : > { %1236 = vst.msk [vmem:[#allocation2 + $0x28] sm:$0x7f] %vm1231_vm12, %v1144_v51 }
 0x1e6   : > { %1247 = vst.msk [vmem:[#allocation2 + $0x80] sm:$0xff] %vm1229_vm13, %v1166_v43 }
 0x1e7   : > { %1276 = vst.msk [vmem:[#allocation2 + $0x80] sm:$0x1] %vm1267_vm14, %v2679_v27 }
 0x1e8   : > { %1563 = vrot.lane.b32.xlu1 %v2469_v47, %s2684_s7  ;;  %1749 = vrot.lane.b32.xlu0 %v2492_v52, %s2686_s9 }
 0x1e9   : > { %1763 = vrot.lane.b32.xlu2 %v2499_v54, %s2686_s9  ;;  %v2435_v54 = vld [vmem:[%s2765_s28 + $0x78] sm:$0x7f] }
 0x1ea   : > { %v1152_v53 = vpop.permute.xlu1 %1151  ;;  %v1150_v56 = vpop.permute.xlu0 %1149 }
 0x1eb   : > { %1240 = vst.msk [vmem:[#allocation2 + $0x48] sm:$0x7f] %vm1231_vm12, %v1152_v53  ;;  %v1172_v57 = vpop.permute.xlu2 %1171  ;;  %v1096_v53 = vld [vmem:[%s2765_s28 + $0xd9] sm:$0x7f] }
 0x1ec   : > { %1239 = vst.msk [vmem:[#allocation2 + $0x40] sm:$0xff] %vm1229_vm13, %v1150_v56 }
 0x1ed   : > { %1272 = vst.msk [vmem:[#allocation2 + $0x40] sm:$0x1] %vm1267_vm14, %v2679_v27 }
 0x1ee   : > { %1250 = vst.msk [vmem:[#allocation2 + $0x98] sm:$0x7f] %vm1231_vm12, %v1172_v57 }
 0x1f0   : > { %1367 = vrot.lane.b32.xlu1 %v2433_v58, %s2685_s8  ;;  %1355 = vrot.lane.b32.xlu0 %v2427_v1, %s2685_s8  ;;  %v2465_v1 = vld [vmem:[%s2765_s28 + $0x78] sm:$0xff] }
 0x1f1   : > { %1181 = vrot.lane.b32.xlu2 %v3599_v55, %s2683_s6 }
 0x1f2   : > { %v1158_v60 = vpop.permute.xlu1 %1157  ;;  %v1156_v59 = vpop.permute.xlu0 %1155 }
 0x1f3   : > { %1243 = vst.msk [vmem:[#allocation2 + $0x60] sm:$0xff] %vm1229_vm13, %v1158_v60  ;;  %v1178_v61 = vpop.permute.xlu2 %1177  ;;  %v2459_v60 = vld [vmem:[%s2765_s28 + $0x48] sm:$0xff] }
 0x1f4   : > { %1274 = vst.msk [vmem:[#allocation2 + $0x60] sm:$0x1] %vm1267_vm14, %v2679_v27 }
 0x1f5   : > { %1242 = vst.msk [vmem:[#allocation2 + $0x58] sm:$0x7f] %vm1231_vm12, %v1156_v59 }
 0x1f6   : > { %1253 = vst.msk [vmem:[#allocation2 + $0xb0] sm:$0xff] %vm1229_vm13, %v1178_v61  ;;  %v2442_v61 = vld [vmem:[%s2765_s28 + $0xb0] sm:$0xff] }
 0x1f7   : > { %1279 = vst.msk [vmem:[#allocation2 + $0xb0] sm:$0x1] %vm1267_vm14, %v2679_v27 }
 0x1f8   : > { %1539 = vrot.lane.b32.xlu1 %v2457_v0, %s2684_s7  ;;  %1183 = vrot.lane.b32.xlu0 %v1094_v37, %s2683_s6 }
 0x1f9   : > { %1551 = vrot.lane.b32.xlu2 %v2463_v4, %s2684_s7  ;;  %v2489_v4 = vld [vmem:[%s2765_s28 + $0x49] sm:$0x7f] }
 0x1fa   : > { %v1164_v46 = vpop.permute.xlu1 %1163  ;;  %v1162_v5 = vpop.permute.xlu0 %1161 }
 0x1fb   : > { %1246 = vst.msk [vmem:[#allocation2 + $0x78] sm:$0x7f] %vm1231_vm12, %v1164_v46  ;;  %v1730_v6 = vpop.permute.xlu2 %1729 }
 0x1fc   : > { %1245 = vst.msk [vmem:[#allocation2 + $0x70] sm:$0xff] %vm1229_vm13, %v1162_v5 }
 0x1fd   : > { %1275 = vst.msk [vmem:[#allocation2 + $0x70] sm:$0x1] %vm1267_vm14, %v2679_v27 }
 0x200   : > { %1393 = vrot.lane.b32.xlu1 %v2446_v8, %s2685_s8  ;;  %1381 = vrot.lane.b32.xlu0 %v2440_v10, %s2685_s8 }
 0x201   : > { %1739 = vrot.lane.b32.xlu2 %v2487_v11, %s2686_s9 }
 0x202   : > { %v1170_v13 = vpop.permute.xlu1 %1169  ;;  %v1168_v12 = vpop.permute.xlu0 %1167 }
 0x203   : > { %1249 = vst.msk [vmem:[#allocation2 + $0x90] sm:$0xff] %vm1229_vm13, %v1170_v13  ;;  %v1732_v14 = vpop.permute.xlu2 %1731 }
 0x204   : > { %1277 = vst.msk [vmem:[#allocation2 + $0x90] sm:$0x1] %vm1267_vm14, %v2679_v27 }
 0x205   : > { %1248 = vst.msk [vmem:[#allocation2 + $0x88] sm:$0x7f] %vm1231_vm12, %v1168_v12 }
 0x208   : > { %1565 = vrot.lane.b32.xlu1 %v2440_v10, %s2684_s7  ;;  %1751 = vrot.lane.b32.xlu0 %v2493_v16, %s2686_s9  ;;  %v2502_v10 = vld [vmem:[%s2765_s28 + $0xb1] sm:$0xff]  ;;  %v2508_v16 = vld [vmem:[%s2765_s28 + $0xe1] sm:$0xff] }
 0x209   : > { %1577 = vrot.lane.b32.xlu2 %v2446_v8, %s2684_s7 }
 0x20a   : > { %v1176_v15 = vpop.permute.xlu1 %1175  ;;  %v1174_v17 = vpop.permute.xlu0 %1173 }
 0x20b   : > { %1252 = vst.msk [vmem:[#allocation2 + $0xa8] sm:$0x7f] %vm1231_vm12, %v1176_v15  ;;  %v1534_v19 = vpop.permute.xlu2 %1533 }
 0x20c   : > { %1251 = vst.msk [vmem:[#allocation2 + $0xa0] sm:$0xff] %vm1229_vm13, %v1174_v17 }
 0x20d   : > { %1278 = vst.msk [vmem:[#allocation2 + $0xa0] sm:$0x1] %vm1267_vm14, %v2679_v27 }
 0x210   : > { %1777 = vrot.lane.b32.xlu1 %v3656_v18, %s2686_s9  ;;  %1765 = vrot.lane.b32.xlu0 %v2500_v20, %s2686_s9  ;;  %v2443_v20 = vld [vmem:[%s2765_s28 + $0xb8] sm:$0x7f] }
 0x211   : > { %1357 = vrot.lane.b32.xlu2 %v2458_v22, %s2685_s8 }
 0x212   : > { %v1530_v21 = vpop.permute.xlu1 %1529  ;;  %v1346_v23 = vpop.permute.xlu0 %1345 }
 0x213   : > { %1435 = vst.msk [vmem:[#allocation2 + $0x1] sm:$0xff] %vm1264_vm2, %v1346_v23  ;;  %v1746_v25 = vpop.permute.xlu2 %1745 }
 0x214   : > { %1619 = vst.msk [vmem:[#allocation2] sm:$0xff] %vm1466_vm3, %v1530_v21 }
 0x215   : > { %1819 = vst.msk [vmem:[#allocation2] sm:$0xff] %vm1649_vm4, %v1730_v6 }
 0x218   : > { %1541 = vrot.lane.b32.xlu1 %v2458_v22, %s2684_s7  ;;  %1369 = vrot.lane.b32.xlu0 %v2434_v24, %s2685_s8  ;;  %v2496_v22 = vld [vmem:[%s2765_s28 + $0x81] sm:$0xff] }
 0x219   : > { %1553 = vrot.lane.b32.xlu2 %v2434_v24, %s2684_s7 }
 0x21a   : > { %v1532_v26 = vpop.permute.xlu1 %1531  ;;  %v1348_v29 = vpop.permute.xlu0 %1347 }
 0x21b   : > { %1437 = vst.msk [vmem:[#allocation2 + $0x9] sm:$0x7f] %vm1436_vm5, %v1348_v29  ;;  %v1536_v62 = vpop.permute.xlu2 %1535  ;;  %v2479_v29 = vld [vmem:[%s2765_s28 + $0xe8] sm:$0xff] }
 0x21c   : > { %1620 = vst.msk [vmem:[#allocation2 + $0x8] sm:$0xff] %vm1466_vm3, %v1532_v26  ;;  %v1850_v63 = vld [vmem:[#allocation2] sm:$0xff] }
 0x21d   : > { %1653 = vst.msk [vmem:[#allocation2 + $0xf] sm:$0x1] %vm1652_vm6, %v2679_v27  ;;  %2513 = vmatmul.msk.f32.vlgmr.msra.gmra.mxu0 %vm1887_vm7, %v1850_v63  ;;  %v2503_v63 = vld [vmem:[%s2765_s28 + $0xb9] sm:$0x7f] }
 0x21e   : > { %1821 = vst.msk [vmem:[#allocation2 + $0x8] sm:$0x7f] %vm1820_vm8, %v1732_v14  ;;  %v2436_v14 = vld [vmem:[%s2765_s28 + $0x80] sm:$0xff] }
 0x220   : > { %1395 = vrot.lane.b32.xlu1 %v2447_v28, %s2685_s8  ;;  %1383 = vrot.lane.b32.xlu0 %v2441_v30, %s2685_s8 }
 0x221   : > { %1741 = vrot.lane.b32.xlu2 %v2488_v31, %s2686_s9 }
 0x222   : > { %v1362_v34 = vpop.permute.xlu1 %1361  ;;  %v1350_v32 = vpop.permute.xlu0 %1349 }
 0x223   : > { %1444 = vst.msk [vmem:[#allocation2 + $0x41] sm:$0xff] %vm1264_vm2, %v1362_v34  ;;  %v1736_v36 = vpop.permute.xlu2 %1735  ;;  %v2437_v34 = vld [vmem:[%s2765_s28 + $0x88] sm:$0x7f] }
 0x224   : > { %1438 = vst.msk [vmem:[#allocation2 + $0x11] sm:$0xff] %vm1264_vm2, %v1350_v32  ;;  %v2509_v32 = vld [vmem:[%s2765_s28 + $0xe9] sm:$0x7f] }
 0x225   : > { %1621 = vst.msk [vmem:[#allocation2 + $0x10] sm:$0xff] %vm1466_vm3, %v1534_v19  ;;  %v1851_v38 = vld [vmem:[#allocation2 + $0x8] sm:$0xff] }
 0x226   : > { %2514 = vmatmul.msk.f32.gmra.mxu0 %vm1887_vm7, %v1851_v38 }
 0x228   : > { %1567 = vrot.lane.b32.xlu1 %v2471_v40, %s2684_s7  ;;  %1753 = vrot.lane.b32.xlu0 %v2494_v41, %s2686_s9 }
 0x229   : > { %1579 = vrot.lane.b32.xlu2 %v2477_v33, %s2684_s7 }
 0x22a   : > { %v1734_v35 = vpop.permute.xlu1 %1733  ;;  %v1546_v44 = vpop.permute.xlu0 %1545 }
 0x22b   : > { %1822 = vst.msk [vmem:[#allocation2 + $0x10] sm:$0xff] %vm1649_vm4, %v1734_v35  ;;  %v1762_v45 = vpop.permute.xlu2 %1761  ;;  %v1098_v35 = vld [vmem:[%s2765_s28 + $0xe9] sm:$0x7f] }
 0x22c   : > { %1627 = vst.msk [vmem:[#allocation2 + $0x40] sm:$0xff] %vm1466_vm3, %v1546_v44  ;;  %v2467_v44 = vld [vmem:[%s2765_s28 + $0x88] sm:$0xff] }
 0x22d   : > { %1828 = vst.msk [vmem:[#allocation2 + $0x40] sm:$0xff] %vm1649_vm4, %v1746_v25 }
 0x230   : > { %1779 = vrot.lane.b32.xlu1 %v2507_v42, %s2686_s9  ;;  %1767 = vrot.lane.b32.xlu0 %v2501_v48, %s2686_s9 }
 0x231   : > { %1359 = vrot.lane.b32.xlu2 %v2429_v49, %s2685_s8  ;;  %v2444_v49 = vld [vmem:[%s2765_s28 + $0xc0] sm:$0xff] }
 0x232   : > { %v1364_v50 = vpop.permute.xlu1 %1363  ;;  %v1352_v51 = vpop.permute.xlu0 %1351  ;;  %v1852_v43 = vld [vmem:[#allocation2 + $0x10] sm:$0xff] }
 0x233   : > { %1445 = vst.msk [vmem:[#allocation2 + $0x49] sm:$0x7f] %vm1436_vm5, %v1364_v50  ;;  %2515 = vmatmul.msk.f32.gmra.mxu0 %vm1887_vm7, %v1852_v43  ;;  %v1538_v47 = vpop.permute.xlu2 %1537  ;;  %v2450_v50 = vld [vmem:[%s2765_s28 + $0xf0] sm:$0xff] }
 0x234   : > { %1439 = vst.msk [vmem:[#allocation2 + $0x19] sm:$0x7f] %vm1436_vm5, %v1352_v51  ;;  %v1858_v52 = vld [vmem:[#allocation2 + $0x40] sm:$0xff]  ;;  %v2497_v51 = vld [vmem:[%s2765_s28 + $0x89] sm:$0x7f] }
 0x235   : > { %1622 = vst.msk [vmem:[#allocation2 + $0x18] sm:$0xff] %vm1466_vm3, %v1536_v62  ;;  %2521 = vmatmul.msk.f32.vlgmr.msra.gmra.mxu1 %vm1887_vm7, %v1858_v52  ;;  %v2473_v62 = vld [vmem:[%s2765_s28 + $0xb8] sm:$0xff] }
 0x236   : > { %1654 = vst.msk [vmem:[#allocation2 + $0x1f] sm:$0x1] %vm1652_vm6, %v2679_v27 }
 0x237   : > { %1823 = vst.msk [vmem:[#allocation2 + $0x18] sm:$0x7f] %vm1820_vm8, %v1736_v36  ;;  %v1092_v36 = vld [vmem:[%s2765_s28 + $0xb9] sm:$0x7f] }
 0x238   : > { %1185 = vrot.lane.b32.xlu1 %v3656_v18, %s2683_s6  ;;  %1371 = vrot.lane.b32.xlu0 %v2435_v54, %s2685_s8  ;;  %v2449_v18 = vld [vmem:[%s2765_s28 + $0xe8] sm:$0x7f] }
 0x239   : > { %1187 = vrot.lane.b32.xlu2 %v1096_v53, %s2683_s6 }
 0x23a   : > { %v1378_v56 = vpop.permute.xlu1 %1377  ;;  %v1548_v57 = vpop.permute.xlu0 %1547 }
 0x23b   : > { %1452 = vst.msk [vmem:[#allocation2 + $0x81] sm:$0xff] %vm1264_vm2, %v1378_v56  ;;  %v1738_v58 = vpop.permute.xlu2 %1737 }
 0x23c   : > { %1628 = vst.msk [vmem:[#allocation2 + $0x48] sm:$0xff] %vm1466_vm3, %v1548_v57 }
 0x23d   : > { %1657 = vst.msk [vmem:[#allocation2 + $0x4f] sm:$0x1] %vm1652_vm6, %v2679_v27 }
 0x23e   : > { %v1853_v59 = vld [vmem:[#allocation2 + $0x18] sm:$0xff] }
 0x23f   : > { %2516 = vmatmul.msk.f32.gmra.mxu0 %vm1887_vm7, %v1853_v59  ;;  %v2445_v59 = vld [vmem:[%s2765_s28 + $0xc8] sm:$0x7f] }
 0x240   : > { %1555 = vrot.lane.b32.xlu1 %v2465_v1, %s2684_s7  ;;  %1543 = vrot.lane.b32.xlu0 %v2459_v60, %s2684_s7  ;;  %v2510_v60 = vld [vmem:[%s2765_s28 + $0xf1] sm:$0xff] }
 0x241   : > { %1385 = vrot.lane.b32.xlu2 %v2442_v61, %s2685_s8 }
 0x242   : > { %v1562_v37 = vpop.permute.xlu1 %1561  ;;  %v1748_v0 = vpop.permute.xlu0 %1747 }
 0x243   : > { %1635 = vst.msk [vmem:[#allocation2 + $0x80] sm:$0xff] %vm1466_vm3, %v1562_v37  ;;  %v1764_v3 = vpop.permute.xlu2 %1763 }
 0x244   : > { %1836 = vst.msk [vmem:[#allocation2 + $0x80] sm:$0xff] %vm1649_vm4, %v1762_v45 }
 0x245   : > { %1829 = vst.msk [vmem:[#allocation2 + $0x48] sm:$0x7f] %vm1820_vm8, %v1748_v0 }
 0x248   : > { %1743 = vrot.lane.b32.xlu1 %v2489_v4, %s2686_s9  ;;  %1397 = vrot.lane.b32.xlu0 %v2448_v2, %s2685_s8  ;;  %v2475_v4 = vld [vmem:[%s2765_s28 + $0xc8] sm:$0xff] }
 0x249   : > { %1755 = vrot.lane.b32.xlu2 %v2495_v39, %s2686_s9  ;;  %v2505_v39 = vld [vmem:[%s2765_s28 + $0xc9] sm:$0x7f] }
 0x24a   : > { %v1366_v46 = vpop.permute.xlu1 %1365  ;;  %v1354_v5 = vpop.permute.xlu0 %1353 }
 0x24b   : > { %1446 = vst.msk [vmem:[#allocation2 + $0x51] sm:$0xff] %vm1264_vm2, %v1366_v46  ;;  %v1866_v7 = vld [vmem:[#allocation2 + $0x80] sm:$0xff]  ;;  %v1182_v6 = vpop.permute.xlu2 %1181 }
 0x24c   : > { %1440 = vst.msk [vmem:[#allocation2 + $0x21] sm:$0xff] %vm1264_vm2, %v1354_v5  ;;  %v1859_v8 = vld [vmem:[#allocation2 + $0x48] sm:$0xff]  ;;  %2529 = vmatmul.msk.f32.vlgmr.msra.gmra.mxu2 %vm1887_vm7, %v1866_v7 }
 0x24d   : > { %1623 = vst.msk [vmem:[#allocation2 + $0x20] sm:$0xff] %vm1466_vm3, %v1538_v47  ;;  %2522 = vmatmul.msk.f32.gmra.mxu1 %vm1887_vm7, %v1859_v8  ;;  %v2511_v8 = vld [vmem:[%s2765_s28 + $0xf9] sm:$0x7f] }
 0x24e   : > { %1824 = vst.msk [vmem:[#allocation2 + $0x20] sm:$0xff] %vm1649_vm4, %v1738_v58 }
 0x24f   : > { %1255 = vst.msk [vmem:[#allocation2 + $0xc0] sm:$0xff] %vm1229_vm13, %v1182_v6 }
 0x250   : > { %1581 = vrot.lane.b32.xlu1 %v2448_v2, %s2684_s7  ;;  %1569 = vrot.lane.b32.xlu0 %v2442_v61, %s2684_s7  ;;  %1280 = vst.msk [vmem:[#allocation2 + $0xc0] sm:$0x1] %vm1267_vm14, %v2679_v27  ;;  %v2481_v2 = vld [vmem:[%s2765_s28 + $0xf8] sm:$0xff] }
 0x251   : > { %1769 = vrot.lane.b32.xlu2 %v2502_v10, %s2686_s9 }
 0x252   : > { %v1380_v9 = vpop.permute.xlu1 %1379  ;;  %v1550_v11 = vpop.permute.xlu0 %1549 }
 0x253   : > { %1453 = vst.msk [vmem:[#allocation2 + $0x89] sm:$0x7f] %vm1436_vm5, %v1380_v9  ;;  %v1552_v13 = vpop.permute.xlu2 %1551 }
 0x254   : > { %1629 = vst.msk [vmem:[#allocation2 + $0x50] sm:$0xff] %vm1466_vm3, %v1550_v11 }
 0x255   : > { %v1854_v12 = vld [vmem:[#allocation2 + $0x20] sm:$0xff] }
 0x256   : > { %2517 = vmatmul.msk.f32.gmra.mxu0 %vm1887_vm7, %v1854_v12 }
 0x258   : > { %1373 = vrot.lane.b32.xlu1 %v2436_v14, %s2685_s8  ;;  %1781 = vrot.lane.b32.xlu0 %v2508_v16, %s2686_s9 }
 0x259   : > { %1557 = vrot.lane.b32.xlu2 %v2436_v14, %s2684_s7 }
 0x25a   : > { %v1564_v15 = vpop.permute.xlu1 %1563  ;;  %v1750_v17 = vpop.permute.xlu0 %1749 }
 0x25b   : > { %1636 = vst.msk [vmem:[#allocation2 + $0x88] sm:$0xff] %vm1466_vm3, %v1564_v15  ;;  %v1740_v19 = vpop.permute.xlu2 %1739 }
 0x25c   : > { %1661 = vst.msk [vmem:[#allocation2 + $0x8f] sm:$0x1] %vm1652_vm6, %v2679_v27 }
 0x25d   : > { %1837 = vst.msk [vmem:[#allocation2 + $0x88] sm:$0x7f] %vm1820_vm8, %v1764_v3 }
 0x25e   : > { %1830 = vst.msk [vmem:[#allocation2 + $0x50] sm:$0xff] %vm1649_vm4, %v1750_v17 }
 0x260   : > { %1399 = vrot.lane.b32.xlu1 %v2449_v18, %s2685_s8  ;;  %1387 = vrot.lane.b32.xlu0 %v2443_v20, %s2685_s8  ;;  %v1100_v18 = vld [vmem:[%s2765_s28 + $0xf9] sm:$0x7f] }
 0x261   : > { %1757 = vrot.lane.b32.xlu2 %v2496_v22, %s2686_s9 }
 0x262   : > { %v1368_v21 = vpop.permute.xlu1 %1367  ;;  %v1356_v23 = vpop.permute.xlu0 %1355 }
 0x263   : > { %1447 = vst.msk [vmem:[#allocation2 + $0x59] sm:$0x7f] %vm1436_vm5, %v1368_v21  ;;  %v1578_v25 = vpop.permute.xlu2 %1577 }
 0x264   : > { %1630 = vst.msk [vmem:[#allocation2 + $0x58] sm:$0xff] %vm1466_vm3, %v1552_v13  ;;  %v1867_v24 = vld [vmem:[#allocation2 + $0x88] sm:$0xff] }
 0x265   : > { %1441 = vst.msk [vmem:[#allocation2 + $0x29] sm:$0x7f] %vm1436_vm5, %v1356_v23  ;;  %v1860_v26 = vld [vmem:[#allocation2 + $0x50] sm:$0xff]  ;;  %2530 = vmatmul.msk.f32.gmra.mxu2 %vm1887_vm7, %v1867_v24 }
 0x266   : > { %1658 = vst.msk [vmem:[#allocation2 + $0x5f] sm:$0x1] %vm1652_vm6, %v2679_v27  ;;  %2523 = vmatmul.msk.f32.gmra.mxu1 %vm1887_vm7, %v1860_v26 }
 0x268   : > { %1583 = vrot.lane.b32.xlu1 %v2479_v29, %s2684_s7  ;;  %1571 = vrot.lane.b32.xlu0 %v2473_v62, %s2684_s7 }
 0x269   : > { %1771 = vrot.lane.b32.xlu2 %v2503_v63, %s2686_s9 }
 0x26a   : > { %v1540_v28 = vpop.permute.xlu1 %1539  ;;  %v1184_v30 = vpop.permute.xlu0 %1183 }
 0x26b   : > { %1624 = vst.msk [vmem:[#allocation2 + $0x28] sm:$0xff] %vm1466_vm3, %v1540_v28  ;;  %v1358_v31 = vpop.permute.xlu2 %1357 }
 0x26c   : > { %1655 = vst.msk [vmem:[#allocation2 + $0x2f] sm:$0x1] %vm1652_vm6, %v2679_v27 }
 0x26d   : > { %1825 = vst.msk [vmem:[#allocation2 + $0x28] sm:$0x7f] %vm1820_vm8, %v1740_v19 }
 0x26e   : > { %1256 = vst.msk [vmem:[#allocation2 + $0xc8] sm:$0x7f] %vm1231_vm12, %v1184_v30 }
 0x26f   : > { %1442 = vst.msk [vmem:[#allocation2 + $0x31] sm:$0xff] %vm1264_vm2, %v1358_v31 }
 0x270   : > { %1375 = vrot.lane.b32.xlu1 %v2437_v34, %s2685_s8  ;;  %1783 = vrot.lane.b32.xlu0 %v2509_v32, %s2686_s9 }
 0x271   : > { %1179 = vrot.lane.b32.xlu2 %v1092_v36, %s2683_s6 }
 0x272   : > { %v1394_v38 = vpop.permute.xlu1 %1393  ;;  %v1382_v40 = vpop.permute.xlu0 %1381 }
 0x273   : > { %1460 = vst.msk [vmem:[#allocation2 + $0xc1] sm:$0xff] %vm1264_vm2, %v1394_v38  ;;  %v1554_v41 = vpop.permute.xlu2 %1553 }
 0x274   : > { %1643 = vst.msk [vmem:[#allocation2 + $0xc0] sm:$0xff] %vm1466_vm3, %v1578_v25  ;;  %v1855_v33 = vld [vmem:[#allocation2 + $0x28] sm:$0xff] }
 0x275   : > { %1454 = vst.msk [vmem:[#allocation2 + $0x91] sm:$0xff] %vm1264_vm2, %v1382_v40  ;;  %2518 = vmatmul.msk.f32.gmra.mxu0 %vm1887_vm7, %v1855_v33 }
 0x278   : > { %1189 = vrot.lane.b32.xlu0 %v2508_v16, %s2683_s6  ;;  %1191 = vrot.lane.b32.xlu1 %v1098_v35, %s2683_s6 }
 0x279   : > { %1559 = vrot.lane.b32.xlu2 %v2467_v44, %s2684_s7 }
 0x27a   : > { %v1566_v45 = vpop.permute.xlu1 %1565  ;;  %v1752_v42 = vpop.permute.xlu0 %1751 }
 0x27b   : > { %1637 = vst.msk [vmem:[#allocation2 + $0x90] sm:$0xff] %vm1466_vm3, %v1566_v45  ;;  %v1742_v48 = vpop.permute.xlu2 %1741 }
 0x27c   : > { %1831 = vst.msk [vmem:[#allocation2 + $0x58] sm:$0x7f] %vm1820_vm8, %v1752_v42 }
 0x280   : > { %1389 = vrot.lane.b32.xlu0 %v2444_v49, %s2685_s8  ;;  %1401 = vrot.lane.b32.xlu1 %v2450_v50, %s2685_s8 }
 0x281   : > { %1759 = vrot.lane.b32.xlu2 %v2497_v51, %s2686_s9 }
 0x282   : > { %v1778_v43 = vpop.permute.xlu1 %1777  ;;  %v1766_v47 = vpop.permute.xlu0 %1765 }
 0x283   : > { %1844 = vst.msk [vmem:[#allocation2 + $0xc0] sm:$0xff] %vm1649_vm4, %v1778_v43  ;;  %v1861_v52 = vld [vmem:[#allocation2 + $0x58] sm:$0xff]  ;;  %v1580_v54 = vpop.permute.xlu2 %1579 }
 0x284   : > { %1838 = vst.msk [vmem:[#allocation2 + $0x90] sm:$0xff] %vm1649_vm4, %v1766_v47  ;;  %2524 = vmatmul.msk.f32.gmra.mxu1 %vm1887_vm7, %v1861_v52 }
 0x288   : > { %1573 = vrot.lane.b32.xlu0 %v2444_v49, %s2684_s7  ;;  %1585 = vrot.lane.b32.xlu1 %v2450_v50, %s2684_s7 }
 0x289   : > { %1773 = vrot.lane.b32.xlu2 %v3599_v55, %s2686_s9  ;;  %v2451_v55 = vld [vmem:[%s2765_s28 + $0xf8] sm:$0x7f]  ;;  %s2546_s28 = sshll.u32 %s2728_s16, 1  ;;  %s2311_s16 = scalar_lea.sflag [#allocation4], %s169_s24 }
 0x28a   : > { %v1542_v53 = vpop.permute.xlu1 %1541  ;;  %v1370_v56 = vpop.permute.xlu0 %1369  ;;  %v1874_v57 = vld [vmem:[#allocation2 + $0xc0] sm:$0xff] }
 0x28b   : > { %1625 = vst.msk [vmem:[#allocation2 + $0x30] sm:$0xff] %vm1466_vm3, %v1542_v53  ;;  %v1868_v58 = vld [vmem:[#allocation2 + $0x90] sm:$0xff]  ;;  %2537 = vmatmul.msk.f32.vlgmr.msra.gmra.mxu3 %vm1887_vm7, %v1874_v57  ;;  %v1360_v1 = vpop.permute.xlu2 %1359 }
 0x28c   : > { %1826 = vst.msk [vmem:[#allocation2 + $0x30] sm:$0xff] %vm1649_vm4, %v1742_v48  ;;  %2531 = vmatmul.msk.f32.gmra.mxu2 %vm1887_vm7, %v1868_v58 }
 0x28d   : > { %1448 = vst.msk [vmem:[#allocation2 + $0x61] sm:$0xff] %vm1264_vm2, %v1370_v56 }
 0x28e   : > { %1631 = vst.msk [vmem:[#allocation2 + $0x60] sm:$0xff] %vm1466_vm3, %v1554_v41 }
 0x28f   : > { %1443 = vst.msk [vmem:[#allocation2 + $0x39] sm:$0x7f] %vm1436_vm5, %v1360_v1 }
 0x290   : > { %1785 = vrot.lane.b32.xlu0 %v2510_v60, %s2686_s9  ;;  %1391 = vrot.lane.b32.xlu1 %v2445_v59, %s2685_s8 }
 0x291   : > { %1403 = vrot.lane.b32.xlu2 %v2451_v55, %s2685_s8 }
 0x292   : > { %v1396_v61 = vpop.permute.xlu1 %1395  ;;  %v1384_v37 = vpop.permute.xlu0 %1383 }
 0x293   : > { %1461 = vst.msk [vmem:[#allocation2 + $0xc9] sm:$0x7f] %vm1436_vm5, %v1396_v61  ;;  %v1856_v0 = vld [vmem:[#allocation2 + $0x30] sm:$0xff]  ;;  %v1188_v3 = vpop.permute.xlu2 %1187 }
 0x294   : > { %1644 = vst.msk [vmem:[#allocation2 + $0xc8] sm:$0xff] %vm1466_vm3, %v1580_v54  ;;  %2519 = vmatmul.msk.f32.gmra.mxu0 %vm1887_vm7, %v1856_v0 }
 0x295   : > { %1455 = vst.msk [vmem:[#allocation2 + $0x99] sm:$0x7f] %vm1436_vm5, %v1384_v37 }
 0x296   : > { %1665 = vst.msk [vmem:[#allocation2 + $0xcf] sm:$0x1] %vm1652_vm6, %v2679_v27 }
 0x297   : > { %1258 = vst.msk [vmem:[#allocation2 + $0xd8] sm:$0x7f] %vm1231_vm12, %v1188_v3 }
 0x298   : > { %1575 = vrot.lane.b32.xlu0 %v2475_v4, %s2684_s7  ;;  %1587 = vrot.lane.b32.xlu1 %v2481_v2, %s2684_s7 }
 0x299   : > { %1775 = vrot.lane.b32.xlu2 %v2505_v39, %s2686_s9 }
 0x29a   : > { %v1568_v46 = vpop.permute.xlu1 %1567  ;;  %v2005_v5 = vpop.f32.mrf.mxu0 }
 0x29b   : > { %1638 = vst.msk [vmem:[#allocation2 + $0x98] sm:$0xff] %vm1466_vm3, %v1568_v46  ;;  %v1754_v7 = vpop.permute.xlu0 %1753  ;;  %v1386_v6 = vpop.permute.xlu2 %1385  ;;  %v2203_v10 = vmul.f32 %v2005_v5, %v2005_v5  ;;  %v2133_v12 = vsel %vm182_vm1, %v2005_v5, 0.0 }
 0x29c   : > { %1662 = vst.msk [vmem:[#allocation2 + $0x9f] sm:$0x1] %vm1652_vm6, %v2679_v27 }
 0x29d   : > { %2101 = vst.msk [vmem:[%s3848_s10] sm:$0xff] %vm182_vm1, %v2005_v5  ;;  %v2235_v20 = vsel %vm182_vm1, %v2203_v10, 0.0 }
 0x29e   : > { %1832 = vst.msk [vmem:[#allocation2 + $0x60] sm:$0xff] %vm1649_vm4, %v1754_v7 }
 0x29f   : > { %1456 = vst.msk [vmem:[#allocation2 + $0xa1] sm:$0xff] %vm1264_vm2, %v1386_v6 }
 0x2a0   : > { %1787 = vrot.lane.b32.xlu0 %v2511_v8, %s2686_s9  ;;  %1193 = vrot.lane.b32.xlu1 %v2510_v60, %s2683_s6  ;;  %s2324_s9 = scalar_lea.hbm %s4184_s3, %s2546_s28 }
 0x2a1   : > { %1195 = vrot.lane.b32.xlu2 %v1100_v18, %s2683_s6  ;;  %s2328_s19 = sshll.u32 %s2324_s9, 4  ;;  %s2329_s19 = int_to_ptr.hbm [resolvable:$true] %s2328_s19 }
 0x2a2   : > { %v1780_v9 = vpop.permute.xlu1 %1779  ;;  %s2628_s20 = sshra.s32 %s2329_s19, 4  ;;  %s2629_s20 = int_to_ptr.hbm [resolvable:$true] %s2628_s20 }
 0x2a3   : > { %1845 = vst.msk [vmem:[#allocation2 + $0xc8] sm:$0x7f] %vm1820_vm8, %v1780_v9  ;;  %v2008_v11 = vpop.f32.mrf.mxu0  ;;  %v1768_v13 = vpop.permute.xlu0 %1767  ;;  %s2630_s26 = scalar_lea.hbm %s2629_s20, 2  ;;  %p2635_p0 = scmp.lt.s32.totalorder %s2629_s20, %s4184_s3 }
 0x2a4   : > { %2102 = vst.msk [vmem:[%s3848_s10 + $0x8] sm:$0xff] %vm182_vm1, %v2008_v11  ;;  %v2134_v14 = vsel %vm182_vm1, %v2008_v11, 0.0  ;;  %v2204_v16 = vmul.f32 %v2008_v11, %v2008_v11  ;;  %v1756_v15 = vpop.permute.xlu2 %1755  ;;  %p2631_p11 = scmp.ne.s32.totalorder %s2629_s20, %s2630_s26  ;;  %p2636_p1 = scmp.lt.s32.totalorder %s2634_s30, %s2630_s26 }
 0x2a5   : > { %v2135_v17 = vadd.f32 %v2134_v14, %v2133_v12  ;;  %1839 = vst.msk [vmem:[#allocation2 + $0x98] sm:$0x7f] %vm1820_vm8, %v1768_v13  ;;  %v1862_v19 = vld [vmem:[#allocation2 + $0x60] sm:$0xff] }
 0x2a6   : > { %v2236_v22 = vsel %vm182_vm1, %v2204_v16, 0.0  ;;  %2525 = vmatmul.msk.f32.gmra.mxu1 %vm1887_vm7, %v1862_v19  ;;  %p2632_p12 = pnand %p2631_p11, %p2745_p5  ;;  %p2637_p2 = por %p2636_p1, %p2635_p0 }
 0x2a7   : > { %v2237_v21 = vadd.f32 %v2236_v22, %v2235_v20 }
 0x2a8   : > { %p2633_p13 = pneg %p2632_p12 }
 0x2aa   : > { %v1186_v23 = vpop.permute.xlu1 %1185  ;;  %v1875_v25 = vld [vmem:[#allocation2 + $0xc8] sm:$0xff]  ;;  %p2638_p3 = pnand %p2637_p2, %p2633_p13 }
 0x2ab   : > { %1257 = vst.msk [vmem:[#allocation2 + $0xd0] sm:$0xff] %vm1229_vm13, %v1186_v23  ;;  %v1372_v24 = vpop.permute.xlu0 %1371  ;;  %2538 = vmatmul.msk.f32.gmra.mxu3 %vm1887_vm7, %v1875_v25 }
 0x2ac   : > { %1281 = vst.msk [vmem:[#allocation2 + $0xd0] sm:$0x1] %vm1267_vm14, %v2679_v27  ;;  %v1869_v26 = vld [vmem:[#allocation2 + $0x98] sm:$0xff]  ;;  %v1770_v29 = vpop.permute.xlu2 %1769 }
 0x2ad   : > { %1449 = vst.msk [vmem:[#allocation2 + $0x69] sm:$0x7f] %vm1436_vm5, %v1372_v24  ;;  %2532 = vmatmul.msk.f32.gmra.mxu2 %vm1887_vm7, %v1869_v26 }
 0x2b0   : > { %v2011_v62 = vpop.f32.mrf.mxu0 }
 0x2b1   : > { %2103 = vst.msk [vmem:[%s3848_s10 + $0x10] sm:$0xff] %vm182_vm1, %v2011_v62  ;;  %v2136_v63 = vsel %vm182_vm1, %v2011_v62, 0.0  ;;  %v2205_v28 = vmul.f32 %v2011_v62, %v2011_v62 }
 0x2b2   : > { %v2137_v30 = vadd.f32 %v2136_v63, %v2135_v17  ;;  %v1556_v31 = vpop.permute.xlu1 %1555  ;;  %v3885_v40 = vpop.f32.mrf.mxu1 }
 0x2b3   : > { %v2238_v34 = vsel %vm182_vm1, %v2205_v28, 0.0  ;;  %1632 = vst.msk [vmem:[#allocation2 + $0x68] sm:$0xff] %vm1466_vm3, %v1556_v31  ;;  %v1544_v32 = vpop.permute.xlu0 %1543 }
 0x2b4   : > { %v2239_v36 = vadd.f32 %v2238_v34, %v2237_v21  ;;  %1659 = vst.msk [vmem:[#allocation2 + $0x6f] sm:$0x1] %vm1652_vm6, %v2679_v27  ;;  %v1558_v38 = vpop.permute.xlu2 %1557 }
 0x2b5   : > { %1833 = vst.msk [vmem:[#allocation2 + $0x68] sm:$0x7f] %vm1820_vm8, %v1756_v15 }
 0x2b6   : > { %1626 = vst.msk [vmem:[#allocation2 + $0x38] sm:$0xff] %vm1466_vm3, %v1544_v32 }
 0x2b7   : > { %1656 = vst.msk [vmem:[#allocation2 + $0x3f] sm:$0x1] %vm1652_vm6, %v2679_v27 }
 0x2b8   : > { %2109 = vst.msk [vmem:[%s3848_s10 + $0x40] sm:$0xff] %vm182_vm1, %v3885_v40 }
 0x2ba   : > { %v1744_v41 = vpop.permute.xlu1 %1743 }
 0x2bb   : > { %1827 = vst.msk [vmem:[#allocation2 + $0x38] sm:$0x7f] %vm1820_vm8, %v1744_v41  ;;  %v1398_v33 = vpop.permute.xlu0 %1397 }
 0x2bc   : > { %1462 = vst.msk [vmem:[#allocation2 + $0xd1] sm:$0xff] %vm1264_vm2, %v1398_v33  ;;  %v2014_v35 = vpop.f32.mrf.mxu0  ;;  %v1758_v44 = vpop.permute.xlu2 %1757  ;;  %v1863_v45 = vld [vmem:[#allocation2 + $0x68] sm:$0xff] }
 0x2bd   : > { %2104 = vst.msk [vmem:[%s3848_s10 + $0x18] sm:$0xff] %vm182_vm1, %v2014_v35  ;;  %v2138_v42 = vsel %vm182_vm1, %v2014_v35, 0.0  ;;  %v2206_v48 = vmul.f32 %v2014_v35, %v2014_v35  ;;  %2526 = vmatmul.msk.f32.gmra.mxu1 %vm1887_vm7, %v1863_v45 }
 0x2be   : > { %v2139_v49 = vadd.f32 %v2138_v42, %v2137_v30 }
 0x2bf   : > { %v2240_v50 = vsel %vm182_vm1, %v2206_v48, 0.0 }
 0x2c0   : > { %v2241_v51 = vadd.f32 %v2240_v50, %v2239_v36 }
 0x2c2   : > { %v1582_v43 = vpop.permute.xlu1 %1581  ;;  %v1857_v47 = vld [vmem:[#allocation2 + $0x38] sm:$0xff] }
 0x2c3   : > { %1645 = vst.msk [vmem:[#allocation2 + $0xd0] sm:$0xff] %vm1466_vm3, %v1582_v43  ;;  %v1570_v52 = vpop.permute.xlu0 %1569  ;;  %2520 = vmatmul.msk.f32.gmra.mxu0 %vm1887_vm7, %v1857_v47 }
 0x2c4   : > { %1639 = vst.msk [vmem:[#allocation2 + $0xa0] sm:$0xff] %vm1466_vm3, %v1570_v52  ;;  %v1772_v54 = vpop.permute.xlu2 %1771 }
 0x2c5   : > { %1840 = vst.msk [vmem:[#allocation2 + $0xa0] sm:$0xff] %vm1649_vm4, %v1770_v29 }
 0x2ca   : > { %v3904_v53 = vpop.f32.mrf.mxu1  ;;  %v1374_v56 = vpop.permute.xlu1 %1373 }
 0x2cb   : > { %2110 = vst.msk [vmem:[%s3848_s10 + $0x48] sm:$0xff] %vm182_vm1, %v3904_v53  ;;  %v1782_v57 = vpop.permute.xlu0 %1781 }
 0x2cc   : > { %1450 = vst.msk [vmem:[#allocation2 + $0x71] sm:$0xff] %vm1264_vm2, %v1374_v56  ;;  %v1870_v58 = vld [vmem:[#allocation2 + $0xa0] sm:$0xff]  ;;  %v1180_v1 = vpop.permute.xlu2 %1179 }
 0x2cd   : > { %1633 = vst.msk [vmem:[#allocation2 + $0x70] sm:$0xff] %vm1466_vm3, %v1558_v38  ;;  %2533 = vmatmul.msk.f32.gmra.mxu2 %vm1887_vm7, %v1870_v58 }
 0x2ce   : > { %1834 = vst.msk [vmem:[#allocation2 + $0x70] sm:$0xff] %vm1649_vm4, %v1758_v44 }
 0x2cf   : > { %1846 = vst.msk [vmem:[#allocation2 + $0xd0] sm:$0xff] %vm1649_vm4, %v1782_v57  ;;  %v3914_v60 = vpop.f32.mrf.mxu2 }
 0x2d0   : > { %1254 = vst.msk [vmem:[#allocation2 + $0xb8] sm:$0x7f] %vm1231_vm12, %v1180_v1 }
 0x2d1   : > { %2117 = vst.msk [vmem:[%s3848_s10 + $0x80] sm:$0xff] %vm182_vm1, %v3914_v60 }
 0x2d2   : > { %v1400_v59 = vpop.permute.xlu1 %1399 }
 0x2d3   : > { %1463 = vst.msk [vmem:[#allocation2 + $0xd9] sm:$0x7f] %vm1436_vm5, %v1400_v59  ;;  %v1388_v55 = vpop.permute.xlu0 %1387  ;;  %v2017_v61 = vpop.f32.mrf.mxu0 }
 0x2d4   : > { %1457 = vst.msk [vmem:[#allocation2 + $0xa9] sm:$0x7f] %vm1436_vm5, %v1388_v55  ;;  %v2140_v37 = vsel %vm182_vm1, %v2017_v61, 0.0  ;;  %v2207_v0 = vmul.f32 %v2017_v61, %v2017_v61  ;;  %v1560_v3 = vpop.permute.xlu2 %1559 }
 0x2d5   : > { %2105 = vst.msk [vmem:[%s3848_s10 + $0x20] sm:$0xff] %vm182_vm1, %v2017_v61  ;;  %v2141_v4 = vadd.f32 %v2140_v37, %v2139_v49  ;;  %v1864_v2 = vld [vmem:[#allocation2 + $0x70] sm:$0xff]  ;;  %v2211_v61 = vmul.f32 %v3885_v40, %v3885_v40 }
 0x2d6   : > { %v2242_v39 = vsel %vm182_vm1, %v2207_v0, 0.0  ;;  %v1876_v46 = vld [vmem:[#allocation2 + $0xd0] sm:$0xff]  ;;  %2527 = vmatmul.msk.f32.gmra.mxu1 %vm1887_vm7, %v1864_v2  ;;  %v2212_v2 = vmul.f32 %v3904_v53, %v3904_v53 }
 0x2d7   : > { %v2243_v5 = vadd.f32 %v2242_v39, %v2241_v51  ;;  %2539 = vmatmul.msk.f32.gmra.mxu3 %vm1887_vm7, %v1876_v46 }
 0x2da   : > { %v1584_v7 = vpop.permute.xlu1 %1583 }
 0x2db   : > { %1646 = vst.msk [vmem:[#allocation2 + $0xd8] sm:$0xff] %vm1466_vm3, %v1584_v7  ;;  %v1572_v6 = vpop.permute.xlu0 %1571  ;;  %v2250_v7 = vsel %vm182_vm1, %v2211_v61, 0.0 }
 0x2dc   : > { %1666 = vst.msk [vmem:[#allocation2 + $0xdf] sm:$0x1] %vm1652_vm6, %v2679_v27  ;;  %v1760_v8 = vpop.permute.xlu2 %1759 }
 0x2dd   : > { %1640 = vst.msk [vmem:[#allocation2 + $0xa8] sm:$0xff] %vm1466_vm3, %v1572_v6  ;;  %v2150_v6 = vsel %vm182_vm1, %v3904_v53, 0.0 }
 0x2de   : > { %1663 = vst.msk [vmem:[#allocation2 + $0xaf] sm:$0x1] %vm1652_vm6, %v2679_v27 }
 0x2df   : > { %1841 = vst.msk [vmem:[#allocation2 + $0xa8] sm:$0x7f] %vm1820_vm8, %v1772_v54 }
 0x2e2   : > { %v1376_v10 = vpop.permute.xlu1 %1375 }
 0x2e3   : > { %v3935_v9 = vpop.f32.mrf.mxu1  ;;  %1451 = vst.msk [vmem:[#allocation2 + $0x79] sm:$0x7f] %vm1436_vm5, %v1376_v10  ;;  %v1784_v11 = vpop.permute.xlu0 %1783 }
 0x2e4   : > { %2111 = vst.msk [vmem:[%s3848_s10 + $0x50] sm:$0xff] %vm182_vm1, %v3935_v9  ;;  %v1774_v13 = vpop.permute.xlu2 %1773 }
 0x2e5   : > { %1634 = vst.msk [vmem:[#allocation2 + $0x78] sm:$0xff] %vm1466_vm3, %v1560_v3 }
 0x2e6   : > { %1847 = vst.msk [vmem:[#allocation2 + $0xd8] sm:$0x7f] %vm1820_vm8, %v1784_v11  ;;  %v1871_v12 = vld [vmem:[#allocation2 + $0xa8] sm:$0xff] }
 0x2e7   : > { %1660 = vst.msk [vmem:[#allocation2 + $0x7f] sm:$0x1] %vm1652_vm6, %v2679_v27  ;;  %2534 = vmatmul.msk.f32.gmra.mxu2 %vm1887_vm7, %v1871_v12 }
 0x2e8   : > { %1835 = vst.msk [vmem:[#allocation2 + $0x78] sm:$0x7f] %vm1820_vm8, %v1760_v8  ;;  %v3947_v14 = vpop.f32.mrf.mxu2  ;;  %v2213_v8 = vmul.f32 %v3935_v9, %v3935_v9 }
 0x2e9   : > { %2118 = vst.msk [vmem:[%s3848_s10 + $0x88] sm:$0xff] %vm182_vm1, %v3947_v14 }
 0x2ea   : > { %v1192_v16 = vpop.permute.xlu1 %1191 }
 0x2eb   : > { %v1190_v15 = vpop.permute.xlu0 %1189  ;;  %1260 = vst.msk [vmem:[#allocation2 + $0xe8] sm:$0x7f] %vm1231_vm12, %v1192_v16 }
 0x2ec   : > { %1259 = vst.msk [vmem:[#allocation2 + $0xe0] sm:$0xff] %vm1229_vm13, %v1190_v15  ;;  %v1404_v19 = vpop.permute.xlu2 %1403 }
 0x2ed   : > { %1282 = vst.msk [vmem:[#allocation2 + $0xe0] sm:$0x1] %vm1267_vm14, %v2679_v27  ;;  %v1877_v17 = vld [vmem:[#allocation2 + $0xd8] sm:$0xff] }
 0x2ee   : > { %2540 = vmatmul.msk.f32.gmra.mxu3 %vm1887_vm7, %v1877_v17  ;;  %1465 = vst.msk [vmem:[#allocation2 + $0xe9] sm:$0x7f] %vm1436_vm5, %v1404_v19  ;;  %v2254_v17 = vsel %vm182_vm1, %v2213_v8, 0.0 }
 0x2ef   : > { %v1865_v18 = vld [vmem:[#allocation2 + $0x78] sm:$0xff] }
 0x2f0   : > { %2528 = vmatmul.msk.f32.gmra.mxu1 %vm1887_vm7, %v1865_v18 }
 0x2f2   : > { %v2020_v20 = vpop.f32.mrf.mxu0  ;;  %v1402_v22 = vpop.permute.xlu1 %1401 }
 0x2f3   : > { %2106 = vst.msk [vmem:[%s3848_s10 + $0x28] sm:$0xff] %vm182_vm1, %v2020_v20  ;;  %v2142_v21 = vsel %vm182_vm1, %v2020_v20, 0.0  ;;  %v2208_v23 = vmul.f32 %v2020_v20, %v2020_v20  ;;  %v1390_v25 = vpop.permute.xlu0 %1389 }
 0x2f4   : > { %v2143_v24 = vadd.f32 %v2142_v21, %v2141_v4  ;;  %1458 = vst.msk [vmem:[#allocation2 + $0xb1] sm:$0xff] %vm1264_vm2, %v1390_v25  ;;  %v1776_v62 = vpop.permute.xlu2 %1775  ;;  %v2148_v4 = vsel %vm182_vm1, %v3885_v40, 0.0  ;;  %v2152_v40 = vsel %vm182_vm1, %v3935_v9, 0.0 }
 0x2f5   : > { %v2244_v26 = vsel %vm182_vm1, %v2208_v23, 0.0  ;;  %1464 = vst.msk [vmem:[#allocation2 + $0xe1] sm:$0xff] %vm1264_vm2, %v1402_v22 }
 0x2f6   : > { %v2245_v29 = vadd.f32 %v2244_v26, %v2243_v5 }
 0x2fa   : > { %v1586_v63 = vpop.permute.xlu1 %1585 }
 0x2fb   : > { %v1574_v28 = vpop.permute.xlu0 %1573  ;;  %1647 = vst.msk [vmem:[#allocation2 + $0xe0] sm:$0xff] %vm1466_vm3, %v1586_v63 }
 0x2fc   : > { %1641 = vst.msk [vmem:[#allocation2 + $0xb0] sm:$0xff] %vm1466_vm3, %v1574_v28  ;;  %v1196_v30 = vpop.permute.xlu2 %1195 }
 0x2fd   : > { %1842 = vst.msk [vmem:[#allocation2 + $0xb0] sm:$0xff] %vm1649_vm4, %v1774_v13  ;;  %v2252_v13 = vsel %vm182_vm1, %v2212_v2, 0.0 }
 0x2fe   : > { %1262 = vst.msk [vmem:[#allocation2 + $0xf8] sm:$0x7f] %vm1231_vm12, %v1196_v30 }
 0x2ff   : > { %1266 = vst.msk [vmem:[#allocation2 + $0xf8] sm:$0xff] %vm1264_vm2, %v2679_v27 }
 0x300   : > { %1468 = vst.msk [vmem:[#allocation2 + $0xf8] sm:$0xff] %vm1466_vm3, %v2679_v27 }
 0x301   : > { %v3968_v31 = vpop.f32.mrf.mxu1  ;;  %1651 = vst.msk [vmem:[#allocation2 + $0xf8] sm:$0xff] %vm1649_vm4, %v2679_v27 }
 0x302   : > { %2112 = vst.msk [vmem:[%s3848_s10 + $0x58] sm:$0xff] %vm182_vm1, %v3968_v31  ;;  %v1392_v34 = vpop.permute.xlu1 %1391  ;;  %v2214_v12 = vmul.f32 %v3968_v31, %v3968_v31  ;;  %v2154_v53 = vsel %vm182_vm1, %v3968_v31, 0.0 }
 0x303   : > { %v1786_v32 = vpop.permute.xlu0 %1785  ;;  %1459 = vst.msk [vmem:[#allocation2 + $0xb9] sm:$0x7f] %vm1436_vm5, %v1392_v34 }
 0x304   : > { %1848 = vst.msk [vmem:[#allocation2 + $0xe0] sm:$0xff] %vm1649_vm4, %v1786_v32  ;;  %v1872_v36 = vld [vmem:[#allocation2 + $0xb0] sm:$0xff]  ;;  %v2256_v22 = vsel %vm182_vm1, %v2214_v12, 0.0 }
 0x305   : > { %2535 = vmatmul.msk.f32.gmra.mxu2 %vm1887_vm7, %v1872_v36  ;;  %1668 = vst.msk [vmem:[#allocation2 + $0xff] sm:$0x1] %vm1652_vm6, %v2679_v27 }
 0x30a   : > { %v1588_v38 = vpop.permute.xlu1 %1587 }
 0x30b   : > { %v1576_v41 = vpop.permute.xlu0 %1575  ;;  %v1878_v33 = vld [vmem:[#allocation2 + $0xe0] sm:$0xff]  ;;  %1648 = vst.msk [vmem:[#allocation2 + $0xe8] sm:$0xff] %vm1466_vm3, %v1588_v38 }
 0x30c   : > { %1642 = vst.msk [vmem:[#allocation2 + $0xb8] sm:$0xff] %vm1466_vm3, %v1576_v41  ;;  %2541 = vmatmul.msk.f32.gmra.mxu3 %vm1887_vm7, %v1878_v33  ;;  %v1881_v58 = vld [vmem:[#allocation2 + $0xf8] sm:$0xff] }
 0x30d   : > { %1664 = vst.msk [vmem:[#allocation2 + $0xbf] sm:$0x1] %vm1652_vm6, %v2679_v27 }
 0x30e   : > { %1843 = vst.msk [vmem:[#allocation2 + $0xb8] sm:$0x7f] %vm1820_vm8, %v1776_v62  ;;  %v3991_v35 = vpop.f32.mrf.mxu3 }
 0x30f   : > { %1667 = vst.msk [vmem:[#allocation2 + $0xef] sm:$0x1] %vm1652_vm6, %v2679_v27  ;;  %v3995_v44 = vpop.f32.mrf.mxu2 }
 0x310   : > { %2119 = vst.msk [vmem:[%s3848_s10 + $0x90] sm:$0xff] %vm182_vm1, %v3995_v44 }
 0x311   : > { %v2023_v45 = vpop.f32.mrf.mxu0  ;;  %2125 = vst.msk [vmem:[%s3848_s10 + $0xc0] sm:$0xff] %vm182_vm1, %v3991_v35 }
 0x312   : > { %2107 = vst.msk [vmem:[%s3848_s10 + $0x30] sm:$0xff] %vm182_vm1, %v2023_v45  ;;  %v2144_v42 = vsel %vm182_vm1, %v2023_v45, 0.0  ;;  %v2209_v48 = vmul.f32 %v2023_v45, %v2023_v45  ;;  %v1194_v49 = vpop.permute.xlu1 %1193 }
 0x313   : > { %v2145_v50 = vadd.f32 %v2144_v42, %v2143_v24  ;;  %v1788_v51 = vpop.permute.xlu0 %1787  ;;  %1261 = vst.msk [vmem:[#allocation2 + $0xf0] sm:$0xff] %vm1229_vm13, %v1194_v49  ;;  %v2219_v42 = vmul.f32 %v3914_v60, %v3914_v60 }
 0x314   : > { %v2246_v43 = vsel %vm182_vm1, %v2209_v48, 0.0  ;;  %1849 = vst.msk [vmem:[#allocation2 + $0xe8] sm:$0x7f] %vm1820_vm8, %v1788_v51 }
 0x315   : > { %v2247_v47 = vadd.f32 %v2246_v43, %v2245_v29  ;;  %v1873_v52 = vld [vmem:[#allocation2 + $0xb8] sm:$0xff]  ;;  %1265 = vst.msk [vmem:[#allocation2 + $0xf0] sm:$0xff] %vm1264_vm2, %v2679_v27  ;;  %v2164_v43 = vsel %vm182_vm1, %v3914_v60, 0.0 }
 0x316   : > { %2536 = vmatmul.msk.f32.gmra.mxu2 %vm1887_vm7, %v1873_v52  ;;  %1283 = vst.msk [vmem:[#allocation2 + $0xf0] sm:$0x1] %vm1267_vm14, %v2679_v27 }
 0x317   : > { %1467 = vst.msk [vmem:[#allocation2 + $0xf0] sm:$0xff] %vm1466_vm3, %v2679_v27 }
 0x318   : > { %1650 = vst.msk [vmem:[#allocation2 + $0xf0] sm:$0xff] %vm1649_vm4, %v2679_v27 }
 0x31b   : > { %v1879_v54 = vld [vmem:[#allocation2 + $0xe8] sm:$0xff] }
 0x31c   : > { %2542 = vmatmul.msk.f32.gmra.mxu3 %vm1887_vm7, %v1879_v54 }
 0x31f   : > { %v1880_v56 = vld [vmem:[#allocation2 + $0xf0] sm:$0xff] }
 0x323   : > { %v2041_v57 = vpop.f32.mrf.mxu1 }
 0x324   : > { %2113 = vst.msk [vmem:[%s3848_s10 + $0x60] sm:$0xff] %vm182_vm1, %v2041_v57  ;;  %2543 = vmatmul.msk.f32.gmra.mxu3 %vm1887_vm7, %v1880_v56  ;;  %v2215_v19 = vmul.f32 %v2041_v57, %v2041_v57  ;;  %v2156_v9 = vsel %vm182_vm1, %v2041_v57, 0.0 }
 0x326   : > { %v2258_v24 = vsel %vm182_vm1, %v2215_v19, 0.0 }
 0x32c   : > { %2544 = vmatmul.msk.f32.gmra.mxu3 %vm1887_vm7, %v1881_v58  ;;  %v2266_v58 = vsel %vm182_vm1, %v2219_v42, 0.0 }
 0x32e   : > { %v4023_v1 = vpop.f32.mrf.mxu3 }
 0x32f   : > { %2126 = vst.msk [vmem:[%s3848_s10 + $0xc8] sm:$0xff] %vm182_vm1, %v4023_v1 }
 0x330   : > { %v4028_v59 = vpop.f32.mrf.mxu2 }
 0x331   : > { %2120 = vst.msk [vmem:[%s3848_s10 + $0x98] sm:$0xff] %vm182_vm1, %v4028_v59 }
 0x33a   : > { %v2044_v27 = vpop.f32.mrf.mxu1 }
 0x33b   : > { %2114 = vst.msk [vmem:[%s3848_s10 + $0x68] sm:$0xff] %vm182_vm1, %v2044_v27  ;;  %v2216_v21 = vmul.f32 %v2044_v27, %v2044_v27  ;;  %v2158_v26 = vsel %vm182_vm1, %v2044_v27, 0.0  ;;  %v2166_v27 = vsel %vm182_vm1, %v3947_v14, 0.0 }
 0x33d   : > { %v2260_v63 = vsel %vm182_vm1, %v2216_v21, 0.0  ;;  %v2227_v21 = vmul.f32 %v3991_v35, %v3991_v35 }
 0x340   : > { %v2026_v55 = vpop.f32.mrf.mxu0 }
 0x341   : > { %2108 = vst.msk [vmem:[%s3848_s10 + $0x38] sm:$0xff] %vm182_vm1, %v2026_v55  ;;  %v2146_v37 = vsel %vm182_vm1, %v2026_v55, 0.0  ;;  %v2210_v0 = vmul.f32 %v2026_v55, %v2026_v55  ;;  %v2221_v55 = vmul.f32 %v3995_v44, %v3995_v44 }
 0x342   : > { %v2147_v3 = vadd.f32 %v2146_v37, %v2145_v50 }
 0x343   : > { %v2248_v39 = vsel %vm182_vm1, %v2210_v0, 0.0  ;;  %v2168_v0 = vsel %vm182_vm1, %v3995_v44, 0.0 }
 0x344   : > { %v2149_v46 = vadd.f32 %v2148_v4, %v2147_v3  ;;  %v2249_v5 = vadd.f32 %v2248_v39, %v2247_v47  ;;  %v2220_v47 = vmul.f32 %v3947_v14, %v3947_v14  ;;  %v2222_v3 = vmul.f32 %v4028_v59, %v4028_v59 }
 0x345   : > { %v2270_v14 = vsel %vm182_vm1, %v2221_v55, 0.0  ;;  %v2170_v39 = vsel %vm182_vm1, %v4028_v59, 0.0 }
 0x346   : > { %v2151_v10 = vadd.f32 %v2150_v6, %v2149_v46  ;;  %v2251_v11 = vadd.f32 %v2250_v7, %v2249_v5  ;;  %v2268_v37 = vsel %vm182_vm1, %v2220_v47, 0.0  ;;  %v2272_v6 = vsel %vm182_vm1, %v2222_v3, 0.0 }
 0x348   : > { %v2153_v16 = vadd.f32 %v2152_v40, %v2151_v10  ;;  %v2253_v15 = vadd.f32 %v2252_v13, %v2251_v11 }
 0x34a   : > { %v2255_v18 = vadd.f32 %v2254_v17, %v2253_v15  ;;  %v2155_v20 = vadd.f32 %v2154_v53, %v2153_v16 }
 0x34c   : > { %v2157_v23 = vadd.f32 %v2156_v9, %v2155_v20  ;;  %v2257_v25 = vadd.f32 %v2256_v22, %v2255_v18 }
 0x34e   : > { %v2159_v29 = vadd.f32 %v2158_v26, %v2157_v23  ;;  %v2259_v62 = vadd.f32 %v2258_v24, %v2257_v25 }
 0x350   : > { %v2261_v28 = vadd.f32 %v2260_v63, %v2259_v62  ;;  %v2065_v30 = vpop.f32.mrf.mxu2  ;;  %v2228_v62 = vmul.f32 %v4023_v1, %v4023_v1 }
 0x351   : > { %2121 = vst.msk [vmem:[%s3848_s10 + $0xa0] sm:$0xff] %vm182_vm1, %v2065_v30  ;;  %v2223_v46 = vmul.f32 %v2065_v30, %v2065_v30  ;;  %v2172_v8 = vsel %vm182_vm1, %v2065_v30, 0.0 }
 0x353   : > { %v2047_v31 = vpop.f32.mrf.mxu1  ;;  %v2274_v11 = vsel %vm182_vm1, %v2223_v46, 0.0 }
 0x354   : > { %2115 = vst.msk [vmem:[%s3848_s10 + $0x70] sm:$0xff] %vm182_vm1, %v2047_v31  ;;  %v2217_v32 = vmul.f32 %v2047_v31, %v2047_v31  ;;  %v2160_v36 = vsel %vm182_vm1, %v2047_v31, 0.0  ;;  %v2282_v31 = vsel %vm182_vm1, %v2227_v21, 0.0 }
 0x355   : > { %v2161_v33 = vadd.f32 %v2160_v36, %v2159_v29  ;;  %v2180_v29 = vsel %vm182_vm1, %v3991_v35, 0.0  ;;  %v2284_v35 = vsel %vm182_vm1, %v2228_v62, 0.0 }
 0x356   : > { %v2262_v41 = vsel %vm182_vm1, %v2217_v32, 0.0  ;;  %v2182_v32 = vsel %vm182_vm1, %v4023_v1, 0.0 }
 0x357   : > { %v2263_v50 = vadd.f32 %v2262_v41, %v2261_v28 }
 0x35a   : > { %v4067_v34 = vpop.f32.mrf.mxu3 }
 0x35b   : > { %2127 = vst.msk [vmem:[%s3848_s10 + $0xd0] sm:$0xff] %vm182_vm1, %v4067_v34  ;;  %v2229_v36 = vmul.f32 %v4067_v34, %v4067_v34 }
 0x36a   : > { %v2068_v38 = vpop.f32.mrf.mxu2 }
 0x36b   : > { %2122 = vst.msk [vmem:[%s3848_s10 + $0xa8] sm:$0xff] %vm182_vm1, %v2068_v38  ;;  %v2224_v59 = vmul.f32 %v2068_v38, %v2068_v38  ;;  %v2174_v15 = vsel %vm182_vm1, %v2068_v38, 0.0 }
 0x36d   : > { %v2050_v45 = vpop.f32.mrf.mxu1  ;;  %v2276_v19 = vsel %vm182_vm1, %v2224_v59, 0.0 }
 0x36e   : > { %2116 = vst.msk [vmem:[%s3848_s10 + $0x78] sm:$0xff] %vm182_vm1, %v2050_v45  ;;  %v2162_v48 = vsel %vm182_vm1, %v2050_v45, 0.0  ;;  %v2218_v49 = vmul.f32 %v2050_v45, %v2050_v45  ;;  %v2184_v45 = vsel %vm182_vm1, %v4067_v34, 0.0 }
 0x36f   : > { %v2163_v51 = vadd.f32 %v2162_v48, %v2161_v33 }
 0x370   : > { %v2264_v52 = vsel %vm182_vm1, %v2218_v49, 0.0 }
 0x371   : > { %v2165_v54 = vadd.f32 %v2164_v43, %v2163_v51  ;;  %v2265_v56 = vadd.f32 %v2264_v52, %v2263_v50  ;;  %v2086_v57 = vpop.f32.mrf.mxu3  ;;  %v2286_v50 = vsel %vm182_vm1, %v2229_v36, 0.0 }
 0x372   : > { %2128 = vst.msk [vmem:[%s3848_s10 + $0xd8] sm:$0xff] %vm182_vm1, %v2086_v57  ;;  %v2230_v42 = vmul.f32 %v2086_v57, %v2086_v57  ;;  %v2186_v1 = vsel %vm182_vm1, %v2086_v57, 0.0 }
 0x373   : > { %v2167_v61 = vadd.f32 %v2166_v27, %v2165_v54  ;;  %v2267_v60 = vadd.f32 %v2266_v58, %v2265_v56 }
 0x374   : > { %v2288_v47 = vsel %vm182_vm1, %v2230_v42, 0.0 }
 0x375   : > { %v2169_v4 = vadd.f32 %v2168_v0, %v2167_v61  ;;  %v2269_v2 = vadd.f32 %v2268_v37, %v2267_v60 }
 0x377   : > { %v2271_v5 = vadd.f32 %v2270_v14, %v2269_v2  ;;  %v2171_v7 = vadd.f32 %v2170_v39, %v2169_v4 }
 0x379   : > { %v2173_v44 = vadd.f32 %v2172_v8, %v2171_v7  ;;  %v2273_v10 = vadd.f32 %v2272_v6, %v2271_v5 }
 0x37b   : > { %v2275_v13 = vadd.f32 %v2274_v11, %v2273_v10  ;;  %v2175_v53 = vadd.f32 %v2174_v15, %v2173_v44 }
 0x37d   : > { %v2277_v20 = vadd.f32 %v2276_v19, %v2275_v13 }
 0x388   : > { %v2071_v40 = vpop.f32.mrf.mxu2 }
 0x389   : > { %2123 = vst.msk [vmem:[%s3848_s10 + $0xb0] sm:$0xff] %vm182_vm1, %v2071_v40  ;;  %v2225_v16 = vmul.f32 %v2071_v40, %v2071_v40  ;;  %v2176_v17 = vsel %vm182_vm1, %v2071_v40, 0.0 }
 0x38a   : > { %v2177_v22 = vadd.f32 %v2176_v17, %v2175_v53 }
 0x38b   : > { %v2278_v18 = vsel %vm182_vm1, %v2225_v16, 0.0 }
 0x38c   : > { %v2279_v24 = vadd.f32 %v2278_v18, %v2277_v20 }
 0x38f   : > { %v2089_v12 = vpop.f32.mrf.mxu3 }
 0x390   : > { %2129 = vst.msk [vmem:[%s3848_s10 + $0xe0] sm:$0xff] %vm182_vm1, %v2089_v12  ;;  %v2231_v52 = vmul.f32 %v2089_v12, %v2089_v12  ;;  %v2188_v56 = vsel %vm182_vm1, %v2089_v12, 0.0 }
 0x392   : > { %v2290_v27 = vsel %vm182_vm1, %v2231_v52, 0.0 }
 0x399   : > { %v2074_v9 = vpop.f32.mrf.mxu2 }
 0x39a   : > { %2124 = vst.msk [vmem:[%s3848_s10 + $0xb8] sm:$0xff] %vm182_vm1, %v2074_v9  ;;  %v2178_v23 = vsel %vm182_vm1, %v2074_v9, 0.0  ;;  %v2226_v25 = vmul.f32 %v2074_v9, %v2074_v9 }
 0x39b   : > { %v2179_v26 = vadd.f32 %v2178_v23, %v2177_v22 }
 0x39c   : > { %v2280_v63 = vsel %vm182_vm1, %v2226_v25, 0.0 }
 0x39d   : > { %v2181_v28 = vadd.f32 %v2180_v29, %v2179_v26  ;;  %v2281_v30 = vadd.f32 %v2280_v63, %v2279_v24 }
 0x39f   : > { %v2183_v38 = vadd.f32 %v2182_v32, %v2181_v28  ;;  %v2283_v41 = vadd.f32 %v2282_v31, %v2281_v30  ;;  %v2092_v33 = vpop.f32.mrf.mxu3 }
 0x3a0   : > { %2130 = vst.msk [vmem:[%s3848_s10 + $0xe8] sm:$0xff] %vm182_vm1, %v2092_v33  ;;  %v2232_v55 = vmul.f32 %v2092_v33, %v2092_v33  ;;  %v2190_v60 = vsel %vm182_vm1, %v2092_v33, 0.0 }
 0x3a1   : > { %v2185_v48 = vadd.f32 %v2184_v45, %v2183_v38  ;;  %v2285_v49 = vadd.f32 %v2284_v35, %v2283_v41 }
 0x3a2   : > { %v2292_v0 = vsel %vm182_vm1, %v2232_v55, 0.0 }
 0x3a3   : > { %v2287_v51 = vadd.f32 %v2286_v50, %v2285_v49  ;;  %v2187_v43 = vadd.f32 %v2186_v1, %v2185_v48 }
 0x3a5   : > { %v2289_v54 = vadd.f32 %v2288_v47, %v2287_v51  ;;  %v2189_v34 = vadd.f32 %v2188_v56, %v2187_v43 }
 0x3a7   : > { %v2095_v58 = vpop.f32.mrf.mxu3  ;;  %v2291_v61 = vadd.f32 %v2290_v27, %v2289_v54  ;;  %v2191_v37 = vadd.f32 %v2190_v60, %v2189_v34 }
 0x3a8   : > { %2131 = vst.msk [vmem:[%s3848_s10 + $0xf0] sm:$0xff] %vm182_vm1, %v2095_v58  ;;  %v2233_v57 = vmul.f32 %v2095_v58, %v2095_v58  ;;  %v2192_v3 = vsel %vm182_vm1, %v2095_v58, 0.0 }
 0x3a9   : > { %v2293_v4 = vadd.f32 %v2292_v0, %v2291_v61  ;;  %v2193_v14 = vadd.f32 %v2192_v3, %v2191_v37 }
 0x3aa   : > { %v2294_v2 = vsel %vm182_vm1, %v2233_v57, 0.0 }
 0x3ab   : > { %v2295_v7 = vadd.f32 %v2294_v2, %v2293_v4 }
 0x3af   : > { %v2098_v39 = vpop.f32.mrf.mxu3 }
 0x3b0   : > { %2132 = vst.msk [vmem:[%s3848_s10 + $0xf8] sm:$0xff] %vm182_vm1, %v2098_v39  ;;  %v2194_v46 = vsel %vm182_vm1, %v2098_v39, 0.0  ;;  %v2234_v5 = vmul.f32 %v2098_v39, %v2098_v39 }
 0x3b1   : > { %v2195_v6 = vadd.f32 %v2194_v46, %v2193_v14 }
 0x3b2   : > { %v2296_v8 = vsel %vm182_vm1, %v2234_v5, 0.0 }
 0x3b3   : > { %v2196_v44 = vrot.slane %v2195_v6, 4  ;;  %v2297_v10 = vadd.f32 %v2296_v8, %v2295_v7 }
 0x3b5   : > { %v2197_v11 = vadd.f32 %v2196_v44, %v2195_v6  ;;  %v2298_v13 = vrot.slane %v2297_v10, 4 }
 0x3b7   : > { %v2198_v40 = vrot.slane %v2197_v11, 2  ;;  %v2299_v12 = vadd.f32 %v2298_v13, %v2297_v10 }
 0x3b9   : > { %v2199_v59 = vadd.f32 %v2198_v40, %v2197_v11  ;;  %v2300_v16 = vrot.slane %v2299_v12, 2 }
 0x3bb   : > { %v2200_v15 = vrot.slane %v2199_v59, 1  ;;  %v2301_v17 = vadd.f32 %v2300_v16, %v2299_v12 }
 0x3bd   : > { %v2201_v53 = vadd.f32 %v2200_v15, %v2199_v59  ;;  %v2302_v19 = vrot.slane %v2301_v17, 1 }
 0x3bf   : > { %2202 = vst.msk [vmem:[%s171_s11] sm:$0x1] %vm185_vm0, %v2201_v53  ;;  %v2303_v18 = vadd.f32 %v2302_v19, %v2301_v17 }
 0x3c1   : > { %2304 = vst.msk [vmem:[%s171_s11 + $0x1] sm:$0x1] %vm185_vm0, %v2303_v18 }
 0x3c2   : > { %2641 = shalt.err (!%p2638_p3)
}
 0x3c3   : > { %2566 = dma.vmem_to_hbm [thread:$0]  (%p2745_p5), %s2327_s17, 32, %s2329_s19, %s2311_s16  }
 0x3c4 PF: > { %p2572_p4 = scmp.ge.s32.totalorder %s2676_s15, 2  ;;  %s2348_s8 = sand.u32 1, %s2664_s12  }
 0x3c5   : > { %s2349_s10 = scalar_lea.sflag [#allocation4], %s2348_s8 }
 0x3c6   : > { %p2569_p7 = pnand %p2572_p4, %p2749_p6 }
 0x3c8   : > { %p2570_p8 = pneg %p2569_p7 }
 0x3ca   : > { %2659 = dma.done.wait (%p2570_p8), %s2349_s10, 32  }
 0x3cb   : > { %2661 = vsyncadd (%p2570_p8), %s2349_s10, 4294967264  ;;  %p14_p9 = scmp.ge.s32.totalorder %s2732_s18, 4   ;;  %s4187_s12 = smov %s2668_s13 }
 0x3cc   : > { %s4188_s13 = smov %s2672_s14  ;;  %s4189_s14 = smov %s2743_s21 }
 0x3cd   : > { %s4190_s15 = smov %s2732_s18  ;;  %16 = sbr.rel (!%p14_p9) target bundleno = 3 (0x3), region = 78 }
 0x3d2   :  { %2355 = vsyncpa [#allocation4], 1 }
 0x3d3   :  { %2357 = vsyncpa [#allocation4 + $0x1], 1 }

</bundles_post_ra>
